<compile_context>
chip_gen: v7x
topology: tpu7x:2x2x1
jax: 0.10.0
libtpu: 0.0.40
codegen_flags: <defaults>
</compile_context>

<pallas_src>
import functools

import jax
import jax.numpy as jnp
from jax import lax
from jax.experimental import pallas as pl
from jax.experimental.pallas import tpu as pltpu


def _cconv_kernel(xs_ref, a_ref, o_ref, xpad_ref, col_ref, *,
                  k, pad, H, W, Wp, L, Nb, C2, TC2, Kp):
    """One batch block of Nb images.

    xs_ref:   (Nb, 2*Cin, H*W)   stacked [real || imag] channels, flat spatial
    a_ref:    (O2p, Kp)          fused dense weight matrix (taps folded into K)
    o_ref:    (Nb, O2p, L)       output, columns indexed y*Wp + x (lane-dense)
    xpad_ref: (2*Cin, sw)        padded-flat scratch, row stride Wp
    col_ref:  (Kp, Nb*L)         sublane-stacked im2col scratch
    """
    # Zero the padded-flat scratch once per grid step.  Only the interior is
    # rewritten per image below, so the zero border is shared by all Nb images
    # (a few unmasked vector stores; cheaper than border-only masked stores).
    xpad_ref[...] = jnp.zeros_like(xpad_ref)

    if Kp > TC2:
        # Zero the contraction-padding rows so stale data cannot leak into the
        # matmul (weights there are zero, but 0 * garbage could be NaN).
        col_ref[pl.ds(TC2, Kp - TC2), :] = jnp.zeros((Kp - TC2, Nb * L),
                                                     jnp.float32)

    for n in range(Nb):
        # Scatter the H input rows of image n into the padded interior
        # (in-kernel zero padding, no XLA pad op).
        for y in range(H):
            xpad_ref[:, pl.ds((y + pad) * Wp + pad, W)] = (
                xs_ref[n, :, pl.ds(y * W, W)])

        # im2col: copy the k*k shifted windows into sublane-stacked slots.
        # Destination offsets are sublane/lane aligned (t*C2 multiple of 8,
        # n*L multiple of 128); the lane-unaligned tap offset is paid once
        # here instead of on every matmul operand load.
        for dy in range(k):
            for dx in range(k):
                t = dy * k + dx
                col_ref[pl.ds(t * C2, C2), pl.ds(n * L, L)] = (
                    xpad_ref[:, pl.ds(dy * Wp + dx, L)])

    # Single fused MXU matmul over all taps, channels and images:
    #   (O2p, Kp) @ (Kp, Nb*L) -> (O2p, Nb*L), contraction depth K = k*k*2*Cin.
    acc = jnp.dot(a_ref[...], col_ref[...], preferred_element_type=jnp.float32)

    # Lane-aligned per-image slices (L is a multiple of 128), dense stores.
    for n in range(Nb):
        o_ref[n] = acc[:, n * L:(n + 1) * L]


def cconv2d_pallas(x, dw_real, dw_im, pw_real, pw_im, padding):
    """x: (N, Cin, H, W, 2) -> (N, Cout, Ho, Wo, 2), all float32."""
    x = x.astype(jnp.float32)
    N, Cin, H, W, _ = x.shape
    k = dw_real.shape[0]
    Cout = pw_real.shape[1]
    Hp, Wp = H + 2 * padding, W + 2 * padding
    Ho, Wo = Hp - k + 1, Wp - k + 1
    C2, O2 = 2 * Cin, 2 * Cout
    T = k * k
    TC2 = T * C2

    acc_w = Ho * Wp                            # valid accumulator width
    L = ((acc_w + 127) // 128) * 128           # lane-dense per-image width
    O2p = ((O2 + 7) // 8) * 8                  # sublane-dense output rows
    Kp = ((TC2 + 7) // 8) * 8                  # contraction rows (mult of 8)
    sw = (k - 1) * Wp + (k - 1) + L            # padded-flat scratch width
                                               # (covers the widest tap window)

    # Batch block per grid step: whole batch while the im2col scratch stays
    # comfortably small (keeps plenty of VMEM headroom even on v7x's 64 MiB).
    Nb = N
    while Nb > 1 and (Kp * Nb * L * 4 > (8 << 20) or N % Nb != 0):
        Nb -= 1

    # (N, Cin, H, W, 2) -> (N, 2*Cin, H*W): [real || imag] channels on
    # sublanes, flattened spatial on lanes.  One small XLA transpose.
    xs = jnp.moveaxis(x, -1, 1).reshape(N, C2, H * W)

    # Fused dense weight matrix (built once on the XLA side):
    # depthwise folded into the pointwise, complex mixing folded into a
    # [[Re, -Im], [Im, Re]] block matrix, taps folded into the K axis.
    dwr = dw_real.reshape(T, Cin).astype(jnp.float32)        # (T, Cin)
    dwi = dw_im.reshape(T, Cin).astype(jnp.float32)
    pwr = pw_real.astype(jnp.float32)                        # (Cin, Cout)
    pwi = pw_im.astype(jnp.float32)
    b_rr = jnp.einsum('tc,co->toc', dwr, pwr)                # (T, Cout, Cin)
    b_ii = jnp.einsum('tc,co->toc', dwi, pwi)
    a = jnp.concatenate(
        [jnp.concatenate([b_rr, -b_ii], axis=2),
         jnp.concatenate([b_ii, b_rr], axis=2)],
        axis=1)                                              # (T, O2, C2)
    af = jnp.transpose(a, (1, 0, 2)).reshape(O2, TC2)        # (O2, T*2*Cin)
    af = jnp.pad(af, ((0, O2p - O2), (0, Kp - TC2)))         # (O2p, Kp)

    kern = functools.partial(_cconv_kernel, k=k, pad=padding, H=H, W=W,
                             Wp=Wp, L=L, Nb=Nb, C2=C2, TC2=TC2, Kp=Kp)

    # NOTE: for production-size spatial dims add an Ho row-strip grid axis
    # (with a (k-1)-row halo) and set vmem_limit_bytes — needed earliest on
    # v7x (64 MiB VMEM, 2 TensorCores).  Unnecessary at these sizes.
    out = pl.pallas_call(
        kern,
        out_shape=jax.ShapeDtypeStruct((N, O2p, L), jnp.float32),
        grid_spec=pltpu.PrefetchScalarGridSpec(
            num_scalar_prefetch=0,
            grid=(N // Nb,),
            in_specs=[
                pl.BlockSpec((Nb, C2, H * W), lambda g: (g, 0, 0)),
                pl.BlockSpec((O2p, Kp), lambda g: (0, 0)),
            ],
            out_specs=pl.BlockSpec((Nb, O2p, L), lambda g: (g, 0, 0)),
            scratch_shapes=[
                pltpu.VMEM((C2, sw), jnp.float32),       # padded-flat image
                pltpu.VMEM((Kp, Nb * L), jnp.float32),   # im2col slab
            ],
        ),
        compiler_params=pltpu.CompilerParams(
            dimension_semantics=("parallel",)),
    )(xs, af)

    # (N, O2p, L): rows [:O2] are [ct_real || ct_im], columns are y*Wp + x;
    # drop the sublane / lane padding and restore the reference layout.
    out = out[:, :O2, :acc_w].reshape(N, 2, Cout, Ho, Wp)[..., :Wo]
    return jnp.moveaxis(out, 1, -1)          # (N, Cout, Ho, Wo, 2)


def _dsconv_reference(x_nchw, dw, pw, padding):
    """Pure-JAX reference: depthwise kxk conv + pointwise 1x1 conv (no bias)."""
    Cin = x_nchw.shape[1]
    x = jnp.transpose(x_nchw, (0, 2, 3, 1))                 # NHWC
    dw_hwio = dw[:, :, None, :]                             # (k, k, 1, Cin)
    y = lax.conv_general_dilated(
        x, dw_hwio, window_strides=(1, 1),
        padding=[(padding, padding), (padding, padding)],
        dimension_numbers=('NHWC', 'HWIO', 'NHWC'),
        feature_group_count=Cin)
    pw_hwio = pw[None, None, :, :]                          # (1, 1, Cin, Cout)
    z = lax.conv_general_dilated(
        y, pw_hwio, window_strides=(1, 1), padding='VALID',
        dimension_numbers=('NHWC', 'HWIO', 'NHWC'))
    return jnp.transpose(z, (0, 3, 1, 2))                   # NCHW


def _cconv2d_reference(x, dw_real, dw_im, pw_real, pw_im, padding):
    xr = x[..., 0].astype(jnp.float32)
    xi = x[..., 1].astype(jnp.float32)
    real_xr = _dsconv_reference(xr, dw_real, pw_real, padding)
    real_xi = _dsconv_reference(xi, dw_real, pw_real, padding)
    im_xr = _dsconv_reference(xr, dw_im, pw_im, padding)
    im_xi = _dsconv_reference(xi, dw_im, pw_im, padding)
    return jnp.stack([real_xr - im_xi, im_xr + real_xi], axis=-1)


if __name__ == "__main__":
    # Module config (stride / output_padding are unused by the forward pass).
    in_channels, out_channels = 4, 6
    kernel_size, padding = 3, 1
    N, H, W = 2, 16, 16

    key = jax.random.PRNGKey(0)
    kx, k1, k2, k3, k4 = jax.random.split(key, 5)

    # Input: (N, C_in, H, W, 2) -- real/imag stacked on the last axis.
    x = jax.random.normal(kx, (N, in_channels, H, W, 2), dtype=jnp.float32)

    # Deterministic parameter init (PyTorch-style uniform, no bias).
    # depthwise weights stored as (k, k, Cin); pointwise as (Cin, Cout).
    dw_bound = 1.0 / (kernel_size * kernel_size) ** 0.5
    pw_bound = 1.0 / in_channels ** 0.5
    dw_real = jax.random.uniform(k1, (kernel_size, kernel_size, in_channels),
                                 jnp.float32, -dw_bound, dw_bound)
    dw_im = jax.random.uniform(k2, (kernel_size, kernel_size, in_channels),
                               jnp.float32, -dw_bound, dw_bound)
    pw_real = jax.random.uniform(k3, (in_channels, out_channels),
                                 jnp.float32, -pw_bound, pw_bound)
    pw_im = jax.random.uniform(k4, (in_channels, out_channels),
                               jnp.float32, -pw_bound, pw_bound)

    out = cconv2d_pallas(x, dw_real, dw_im, pw_real, pw_im, padding)
    out = jax.block_until_ready(out)

    ref = _cconv2d_reference(x, dw_real, dw_im, pw_real, pw_im, padding)
    ref = jax.block_until_ready(ref)

    assert out.shape == (N, out_channels, H, W, 2), out.shape
    assert jnp.allclose(out, ref, rtol=1e-4, atol=1e-4), \
        float(jnp.max(jnp.abs(out - ref)))

    print("KERNEL_OK")
</pallas_src>

<mosaic_0001>
module attributes {stable_mosaic.version = 11 : i64} {
  func.func @_cconv_kernel(%arg0: i32, %arg1: memref<2x8x256xf32, #tpu.memory_space<vmem>>, %arg2: memref<16x72xf32, #tpu.memory_space<vmem>>, %arg3: memref<2x16x384xf32, #tpu.memory_space<vmem>>, %arg4: memref<8x422xf32, #tpu.memory_space<vmem>>, %arg5: memref<72x768xf32, #tpu.memory_space<vmem>>) attributes {dimension_semantics = [#tpu.dimension_semantics<parallel>], iteration_bounds = array<i64: 1>, scalar_prefetch = 0 : i64, scratch_operands = 2 : i64, tpu.core_type = #tpu.core_type<tc>, window_params = [{transform_indices = @transform_0, window_bounds = array<i64: 2, 8, 256>}, {pipeline_mode = #tpu.pipeline_mode<synchronous>, transform_indices = @transform_1, window_bounds = array<i64: 16, 72>}, {transform_indices = @transform_2, window_bounds = array<i64: 2, 16, 384>}]} {
    %cst = arith.constant 0.000000e+00 : f32
    %0 = vector.broadcast %cst : f32 to vector<8x422xf32>
    %c0 = arith.constant 0 : index
    %c0_0 = arith.constant 0 : index
    %1 = vector.load %arg4[%c0, %c0_0] : memref<8x422xf32, #tpu.memory_space<vmem>>, vector<8x422xf32>
    tpu.vector_store %arg4[%c0, %c0_0], %0 {strides = array<i32>} : memref<8x422xf32, #tpu.memory_space<vmem>>, vector<8x422xf32>,
    %c0_1 = arith.constant 0 : index
    %c0_2 = arith.constant 0 : index
    %c0_3 = arith.constant 0 : index
    %2 = vector.load %arg1[%c0_1, %c0_2, %c0_3] : memref<2x8x256xf32, #tpu.memory_space<vmem>>, vector<1x8x16xf32>
    %3 = vector.shape_cast %2 : vector<1x8x16xf32> to vector<8x16xf32>
    %c0_4 = arith.constant 0 : index
    %c19 = arith.constant 19 : index
    %4 = vector.load %arg4[%c0_4, %c19] : memref<8x422xf32, #tpu.memory_space<vmem>>, vector<8x16xf32>
    tpu.vector_store %arg4[%c0_4, %c19], %3 {strides = array<i32>} : memref<8x422xf32, #tpu.memory_space<vmem>>, vector<8x16xf32>,
    %c0_5 = arith.constant 0 : index
    %c0_6 = arith.constant 0 : index
    %c16 = arith.constant 16 : index
    %5 = vector.load %arg1[%c0_5, %c0_6, %c16] : memref<2x8x256xf32, #tpu.memory_space<vmem>>, vector<1x8x16xf32>
    %6 = vector.shape_cast %5 : vector<1x8x16xf32> to vector<8x16xf32>
    %c0_7 = arith.constant 0 : index
    %c37 = arith.constant 37 : index
    %7 = vector.load %arg4[%c0_7, %c37] : memref<8x422xf32, #tpu.memory_space<vmem>>, vector<8x16xf32>
    tpu.vector_store %arg4[%c0_7, %c37], %6 {strides = array<i32>} : memref<8x422xf32, #tpu.memory_space<vmem>>, vector<8x16xf32>,
    %c0_8 = arith.constant 0 : index
    %c0_9 = arith.constant 0 : index
    %c32 = arith.constant 32 : index
    %8 = vector.load %arg1[%c0_8, %c0_9, %c32] : memref<2x8x256xf32, #tpu.memory_space<vmem>>, vector<1x8x16xf32>
    %9 = vector.shape_cast %8 : vector<1x8x16xf32> to vector<8x16xf32>
    %c0_10 = arith.constant 0 : index
    %c55 = arith.constant 55 : index
    %10 = vector.load %arg4[%c0_10, %c55] : memref<8x422xf32, #tpu.memory_space<vmem>>, vector<8x16xf32>
    tpu.vector_store %arg4[%c0_10, %c55], %9 {strides = array<i32>} : memref<8x422xf32, #tpu.memory_space<vmem>>, vector<8x16xf32>,
    %c0_11 = arith.constant 0 : index
    %c0_12 = arith.constant 0 : index
    %c48 = arith.constant 48 : index
    %11 = vector.load %arg1[%c0_11, %c0_12, %c48] : memref<2x8x256xf32, #tpu.memory_space<vmem>>, vector<1x8x16xf32>
    %12 = vector.shape_cast %11 : vector<1x8x16xf32> to vector<8x16xf32>
    %c0_13 = arith.constant 0 : index
    %c73 = arith.constant 73 : index
    %13 = vector.load %arg4[%c0_13, %c73] : memref<8x422xf32, #tpu.memory_space<vmem>>, vector<8x16xf32>
    tpu.vector_store %arg4[%c0_13, %c73], %12 {strides = array<i32>} : memref<8x422xf32, #tpu.memory_space<vmem>>, vector<8x16xf32>,
    %c0_14 = arith.constant 0 : index
    %c0_15 = arith.constant 0 : index
    %c64 = arith.constant 64 : index
    %14 = vector.load %arg1[%c0_14, %c0_15, %c64] : memref<2x8x256xf32, #tpu.memory_space<vmem>>, vector<1x8x16xf32>
    %15 = vector.shape_cast %14 : vector<1x8x16xf32> to vector<8x16xf32>
    %c0_16 = arith.constant 0 : index
    %c91 = arith.constant 91 : index
    %16 = vector.load %arg4[%c0_16, %c91] : memref<8x422xf32, #tpu.memory_space<vmem>>, vector<8x16xf32>
    tpu.vector_store %arg4[%c0_16, %c91], %15 {strides = array<i32>} : memref<8x422xf32, #tpu.memory_space<vmem>>, vector<8x16xf32>,
    %c0_17 = arith.constant 0 : index
    %c0_18 = arith.constant 0 : index
    %c80 = arith.constant 80 : index
    %17 = vector.load %arg1[%c0_17, %c0_18, %c80] : memref<2x8x256xf32, #tpu.memory_space<vmem>>, vector<1x8x16xf32>
    %18 = vector.shape_cast %17 : vector<1x8x16xf32> to vector<8x16xf32>
    %c0_19 = arith.constant 0 : index
    %c109 = arith.constant 109 : index
    %19 = vector.load %arg4[%c0_19, %c109] : memref<8x422xf32, #tpu.memory_space<vmem>>, vector<8x16xf32>
    tpu.vector_store %arg4[%c0_19, %c109], %18 {strides = array<i32>} : memref<8x422xf32, #tpu.memory_space<vmem>>, vector<8x16xf32>,
    %c0_20 = arith.constant 0 : index
    %c0_21 = arith.constant 0 : index
    %c96 = arith.constant 96 : index
    %20 = vector.load %arg1[%c0_20, %c0_21, %c96] : memref<2x8x256xf32, #tpu.memory_space<vmem>>, vector<1x8x16xf32>
    %21 = vector.shape_cast %20 : vector<1x8x16xf32> to vector<8x16xf32>
    %c0_22 = arith.constant 0 : index
    %c127 = arith.constant 127 : index
    %22 = vector.load %arg4[%c0_22, %c127] : memref<8x422xf32, #tpu.memory_space<vmem>>, vector<8x16xf32>
    tpu.vector_store %arg4[%c0_22, %c127], %21 {strides = array<i32>} : memref<8x422xf32, #tpu.memory_space<vmem>>, vector<8x16xf32>,
    %c0_23 = arith.constant 0 : index
    %c0_24 = arith.constant 0 : index
    %c112 = arith.constant 112 : index
    %23 = vector.load %arg1[%c0_23, %c0_24, %c112] : memref<2x8x256xf32, #tpu.memory_space<vmem>>, vector<1x8x16xf32>
    %24 = vector.shape_cast %23 : vector<1x8x16xf32> to vector<8x16xf32>
    %c0_25 = arith.constant 0 : index
    %c145 = arith.constant 145 : index
    %25 = vector.load %arg4[%c0_25, %c145] : memref<8x422xf32, #tpu.memory_space<vmem>>, vector<8x16xf32>
    tpu.vector_store %arg4[%c0_25, %c145], %24 {strides = array<i32>} : memref<8x422xf32, #tpu.memory_space<vmem>>, vector<8x16xf32>,
    %c0_26 = arith.constant 0 : index
    %c0_27 = arith.constant 0 : index
    %c128 = arith.constant 128 : index
    %26 = vector.load %arg1[%c0_26, %c0_27, %c128] : memref<2x8x256xf32, #tpu.memory_space<vmem>>, vector<1x8x16xf32>
    %27 = vector.shape_cast %26 : vector<1x8x16xf32> to vector<8x16xf32>
    %c0_28 = arith.constant 0 : index
    %c163 = arith.constant 163 : index
    %28 = vector.load %arg4[%c0_28, %c163] : memref<8x422xf32, #tpu.memory_space<vmem>>, vector<8x16xf32>
    tpu.vector_store %arg4[%c0_28, %c163], %27 {strides = array<i32>} : memref<8x422xf32, #tpu.memory_space<vmem>>, vector<8x16xf32>,
    %c0_29 = arith.constant 0 : index
    %c0_30 = arith.constant 0 : index
    %c144 = arith.constant 144 : index
    %29 = vector.load %arg1[%c0_29, %c0_30, %c144] : memref<2x8x256xf32, #tpu.memory_space<vmem>>, vector<1x8x16xf32>
    %30 = vector.shape_cast %29 : vector<1x8x16xf32> to vector<8x16xf32>
    %c0_31 = arith.constant 0 : index
    %c181 = arith.constant 181 : index
    %31 = vector.load %arg4[%c0_31, %c181] : memref<8x422xf32, #tpu.memory_space<vmem>>, vector<8x16xf32>
    tpu.vector_store %arg4[%c0_31, %c181], %30 {strides = array<i32>} : memref<8x422xf32, #tpu.memory_space<vmem>>, vector<8x16xf32>,
    %c0_32 = arith.constant 0 : index
    %c0_33 = arith.constant 0 : index
    %c160 = arith.constant 160 : index
    %32 = vector.load %arg1[%c0_32, %c0_33, %c160] : memref<2x8x256xf32, #tpu.memory_space<vmem>>, vector<1x8x16xf32>
    %33 = vector.shape_cast %32 : vector<1x8x16xf32> to vector<8x16xf32>
    %c0_34 = arith.constant 0 : index
    %c199 = arith.constant 199 : index
    %34 = vector.load %arg4[%c0_34, %c199] : memref<8x422xf32, #tpu.memory_space<vmem>>, vector<8x16xf32>
    tpu.vector_store %arg4[%c0_34, %c199], %33 {strides = array<i32>} : memref<8x422xf32, #tpu.memory_space<vmem>>, vector<8x16xf32>,
    %c0_35 = arith.constant 0 : index
    %c0_36 = arith.constant 0 : index
    %c176 = arith.constant 176 : index
    %35 = vector.load %arg1[%c0_35, %c0_36, %c176] : memref<2x8x256xf32, #tpu.memory_space<vmem>>, vector<1x8x16xf32>
    %36 = vector.shape_cast %35 : vector<1x8x16xf32> to vector<8x16xf32>
    %c0_37 = arith.constant 0 : index
    %c217 = arith.constant 217 : index
    %37 = vector.load %arg4[%c0_37, %c217] : memref<8x422xf32, #tpu.memory_space<vmem>>, vector<8x16xf32>
    tpu.vector_store %arg4[%c0_37, %c217], %36 {strides = array<i32>} : memref<8x422xf32, #tpu.memory_space<vmem>>, vector<8x16xf32>,
    %c0_38 = arith.constant 0 : index
    %c0_39 = arith.constant 0 : index
    %c192 = arith.constant 192 : index
    %38 = vector.load %arg1[%c0_38, %c0_39, %c192] : memref<2x8x256xf32, #tpu.memory_space<vmem>>, vector<1x8x16xf32>
    %39 = vector.shape_cast %38 : vector<1x8x16xf32> to vector<8x16xf32>
    %c0_40 = arith.constant 0 : index
    %c235 = arith.constant 235 : index
    %40 = vector.load %arg4[%c0_40, %c235] : memref<8x422xf32, #tpu.memory_space<vmem>>, vector<8x16xf32>
    tpu.vector_store %arg4[%c0_40, %c235], %39 {strides = array<i32>} : memref<8x422xf32, #tpu.memory_space<vmem>>, vector<8x16xf32>,
    %c0_41 = arith.constant 0 : index
    %c0_42 = arith.constant 0 : index
    %c208 = arith.constant 208 : index
    %41 = vector.load %arg1[%c0_41, %c0_42, %c208] : memref<2x8x256xf32, #tpu.memory_space<vmem>>, vector<1x8x16xf32>
    %42 = vector.shape_cast %41 : vector<1x8x16xf32> to vector<8x16xf32>
    %c0_43 = arith.constant 0 : index
    %c253 = arith.constant 253 : index
    %43 = vector.load %arg4[%c0_43, %c253] : memref<8x422xf32, #tpu.memory_space<vmem>>, vector<8x16xf32>
    tpu.vector_store %arg4[%c0_43, %c253], %42 {strides = array<i32>} : memref<8x422xf32, #tpu.memory_space<vmem>>, vector<8x16xf32>,
    %c0_44 = arith.constant 0 : index
    %c0_45 = arith.constant 0 : index
    %c224 = arith.constant 224 : index
    %44 = vector.load %arg1[%c0_44, %c0_45, %c224] : memref<2x8x256xf32, #tpu.memory_space<vmem>>, vector<1x8x16xf32>
    %45 = vector.shape_cast %44 : vector<1x8x16xf32> to vector<8x16xf32>
    %c0_46 = arith.constant 0 : index
    %c271 = arith.constant 271 : index
    %46 = vector.load %arg4[%c0_46, %c271] : memref<8x422xf32, #tpu.memory_space<vmem>>, vector<8x16xf32>
    tpu.vector_store %arg4[%c0_46, %c271], %45 {strides = array<i32>} : memref<8x422xf32, #tpu.memory_space<vmem>>, vector<8x16xf32>,
    %c0_47 = arith.constant 0 : index
    %c0_48 = arith.constant 0 : index
    %c240 = arith.constant 240 : index
    %47 = vector.load %arg1[%c0_47, %c0_48, %c240] : memref<2x8x256xf32, #tpu.memory_space<vmem>>, vector<1x8x16xf32>
    %48 = vector.shape_cast %47 : vector<1x8x16xf32> to vector<8x16xf32>
    %c0_49 = arith.constant 0 : index
    %c289 = arith.constant 289 : index
    %49 = vector.load %arg4[%c0_49, %c289] : memref<8x422xf32, #tpu.memory_space<vmem>>, vector<8x16xf32>
    tpu.vector_store %arg4[%c0_49, %c289], %48 {strides = array<i32>} : memref<8x422xf32, #tpu.memory_space<vmem>>, vector<8x16xf32>,
    %c0_50 = arith.constant 0 : index
    %c0_51 = arith.constant 0 : index
    %50 = vector.load %arg4[%c0_50, %c0_51] : memref<8x422xf32, #tpu.memory_space<vmem>>, vector<8x384xf32>
    %c0_52 = arith.constant 0 : index
    %c0_53 = arith.constant 0 : index
    %51 = vector.load %arg5[%c0_52, %c0_53] : memref<72x768xf32, #tpu.memory_space<vmem>>, vector<8x384xf32>
    tpu.vector_store %arg5[%c0_52, %c0_53], %50 {strides = array<i32>} : memref<72x768xf32, #tpu.memory_space<vmem>>, vector<8x384xf32>,
    %c0_54 = arith.constant 0 : index
    %c1 = arith.constant 1 : index
    %52 = vector.load %arg4[%c0_54, %c1] : memref<8x422xf32, #tpu.memory_space<vmem>>, vector<8x384xf32>
    %c8 = arith.constant 8 : index
    %c0_55 = arith.constant 0 : index
    %53 = vector.load %arg5[%c8, %c0_55] : memref<72x768xf32, #tpu.memory_space<vmem>>, vector<8x384xf32>
    tpu.vector_store %arg5[%c8, %c0_55], %52 {strides = array<i32>} : memref<72x768xf32, #tpu.memory_space<vmem>>, vector<8x384xf32>,
    %c0_56 = arith.constant 0 : index
    %c2 = arith.constant 2 : index
    %54 = vector.load %arg4[%c0_56, %c2] : memref<8x422xf32, #tpu.memory_space<vmem>>, vector<8x384xf32>
    %c16_57 = arith.constant 16 : index
    %c0_58 = arith.constant 0 : index
    %55 = vector.load %arg5[%c16_57, %c0_58] : memref<72x768xf32, #tpu.memory_space<vmem>>, vector<8x384xf32>
    tpu.vector_store %arg5[%c16_57, %c0_58], %54 {strides = array<i32>} : memref<72x768xf32, #tpu.memory_space<vmem>>, vector<8x384xf32>,
    %c0_59 = arith.constant 0 : index
    %c18 = arith.constant 18 : index
    %56 = vector.load %arg4[%c0_59, %c18] : memref<8x422xf32, #tpu.memory_space<vmem>>, vector<8x384xf32>
    %c24 = arith.constant 24 : index
    %c0_60 = arith.constant 0 : index
    %57 = vector.load %arg5[%c24, %c0_60] : memref<72x768xf32, #tpu.memory_space<vmem>>, vector<8x384xf32>
    tpu.vector_store %arg5[%c24, %c0_60], %56 {strides = array<i32>} : memref<72x768xf32, #tpu.memory_space<vmem>>, vector<8x384xf32>,
    %c0_61 = arith.constant 0 : index
    %c19_62 = arith.constant 19 : index
    %58 = vector.load %arg4[%c0_61, %c19_62] : memref<8x422xf32, #tpu.memory_space<vmem>>, vector<8x384xf32>
    %c32_63 = arith.constant 32 : index
    %c0_64 = arith.constant 0 : index
    %59 = vector.load %arg5[%c32_63, %c0_64] : memref<72x768xf32, #tpu.memory_space<vmem>>, vector<8x384xf32>
    tpu.vector_store %arg5[%c32_63, %c0_64], %58 {strides = array<i32>} : memref<72x768xf32, #tpu.memory_space<vmem>>, vector<8x384xf32>,
    %c0_65 = arith.constant 0 : index
    %c20 = arith.constant 20 : index
    %60 = vector.load %arg4[%c0_65, %c20] : memref<8x422xf32, #tpu.memory_space<vmem>>, vector<8x384xf32>
    %c40 = arith.constant 40 : index
    %c0_66 = arith.constant 0 : index
    %61 = vector.load %arg5[%c40, %c0_66] : memref<72x768xf32, #tpu.memory_space<vmem>>, vector<8x384xf32>
    tpu.vector_store %arg5[%c40, %c0_66], %60 {strides = array<i32>} : memref<72x768xf32, #tpu.memory_space<vmem>>, vector<8x384xf32>,
    %c0_67 = arith.constant 0 : index
    %c36 = arith.constant 36 : index
    %62 = vector.load %arg4[%c0_67, %c36] : memref<8x422xf32, #tpu.memory_space<vmem>>, vector<8x384xf32>
    %c48_68 = arith.constant 48 : index
    %c0_69 = arith.constant 0 : index
    %63 = vector.load %arg5[%c48_68, %c0_69] : memref<72x768xf32, #tpu.memory_space<vmem>>, vector<8x384xf32>
    tpu.vector_store %arg5[%c48_68, %c0_69], %62 {strides = array<i32>} : memref<72x768xf32, #tpu.memory_space<vmem>>, vector<8x384xf32>,
    %c0_70 = arith.constant 0 : index
    %c37_71 = arith.constant 37 : index
    %64 = vector.load %arg4[%c0_70, %c37_71] : memref<8x422xf32, #tpu.memory_space<vmem>>, vector<8x384xf32>
    %c56 = arith.constant 56 : index
    %c0_72 = arith.constant 0 : index
    %65 = vector.load %arg5[%c56, %c0_72] : memref<72x768xf32, #tpu.memory_space<vmem>>, vector<8x384xf32>
    tpu.vector_store %arg5[%c56, %c0_72], %64 {strides = array<i32>} : memref<72x768xf32, #tpu.memory_space<vmem>>, vector<8x384xf32>,
    %c0_73 = arith.constant 0 : index
    %c38 = arith.constant 38 : index
    %66 = vector.load %arg4[%c0_73, %c38] : memref<8x422xf32, #tpu.memory_space<vmem>>, vector<8x384xf32>
    %c64_74 = arith.constant 64 : index
    %c0_75 = arith.constant 0 : index
    %67 = vector.load %arg5[%c64_74, %c0_75] : memref<72x768xf32, #tpu.memory_space<vmem>>, vector<8x384xf32>
    tpu.vector_store %arg5[%c64_74, %c0_75], %66 {strides = array<i32>} : memref<72x768xf32, #tpu.memory_space<vmem>>, vector<8x384xf32>,
    %c1_76 = arith.constant 1 : index
    %c0_77 = arith.constant 0 : index
    %c0_78 = arith.constant 0 : index
    %68 = vector.load %arg1[%c1_76, %c0_77, %c0_78] : memref<2x8x256xf32, #tpu.memory_space<vmem>>, vector<1x8x16xf32>
    %69 = vector.shape_cast %68 : vector<1x8x16xf32> to vector<8x16xf32>
    %c0_79 = arith.constant 0 : index
    %c19_80 = arith.constant 19 : index
    %70 = vector.load %arg4[%c0_79, %c19_80] : memref<8x422xf32, #tpu.memory_space<vmem>>, vector<8x16xf32>
    tpu.vector_store %arg4[%c0_79, %c19_80], %69 {strides = array<i32>} : memref<8x422xf32, #tpu.memory_space<vmem>>, vector<8x16xf32>,
    %c1_81 = arith.constant 1 : index
    %c0_82 = arith.constant 0 : index
    %c16_83 = arith.constant 16 : index
    %71 = vector.load %arg1[%c1_81, %c0_82, %c16_83] : memref<2x8x256xf32, #tpu.memory_space<vmem>>, vector<1x8x16xf32>
    %72 = vector.shape_cast %71 : vector<1x8x16xf32> to vector<8x16xf32>
    %c0_84 = arith.constant 0 : index
    %c37_85 = arith.constant 37 : index
    %73 = vector.load %arg4[%c0_84, %c37_85] : memref<8x422xf32, #tpu.memory_space<vmem>>, vector<8x16xf32>
    tpu.vector_store %arg4[%c0_84, %c37_85], %72 {strides = array<i32>} : memref<8x422xf32, #tpu.memory_space<vmem>>, vector<8x16xf32>,
    %c1_86 = arith.constant 1 : index
    %c0_87 = arith.constant 0 : index
    %c32_88 = arith.constant 32 : index
    %74 = vector.load %arg1[%c1_86, %c0_87, %c32_88] : memref<2x8x256xf32, #tpu.memory_space<vmem>>, vector<1x8x16xf32>
    %75 = vector.shape_cast %74 : vector<1x8x16xf32> to vector<8x16xf32>
    %c0_89 = arith.constant 0 : index
    %c55_90 = arith.constant 55 : index
    %76 = vector.load %arg4[%c0_89, %c55_90] : memref<8x422xf32, #tpu.memory_space<vmem>>, vector<8x16xf32>
    tpu.vector_store %arg4[%c0_89, %c55_90], %75 {strides = array<i32>} : memref<8x422xf32, #tpu.memory_space<vmem>>, vector<8x16xf32>,
    %c1_91 = arith.constant 1 : index
    %c0_92 = arith.constant 0 : index
    %c48_93 = arith.constant 48 : index
    %77 = vector.load %arg1[%c1_91, %c0_92, %c48_93] : memref<2x8x256xf32, #tpu.memory_space<vmem>>, vector<1x8x16xf32>
    %78 = vector.shape_cast %77 : vector<1x8x16xf32> to vector<8x16xf32>
    %c0_94 = arith.constant 0 : index
    %c73_95 = arith.constant 73 : index
    %79 = vector.load %arg4[%c0_94, %c73_95] : memref<8x422xf32, #tpu.memory_space<vmem>>, vector<8x16xf32>
    tpu.vector_store %arg4[%c0_94, %c73_95], %78 {strides = array<i32>} : memref<8x422xf32, #tpu.memory_space<vmem>>, vector<8x16xf32>,
    %c1_96 = arith.constant 1 : index
    %c0_97 = arith.constant 0 : index
    %c64_98 = arith.constant 64 : index
    %80 = vector.load %arg1[%c1_96, %c0_97, %c64_98] : memref<2x8x256xf32, #tpu.memory_space<vmem>>, vector<1x8x16xf32>
    %81 = vector.shape_cast %80 : vector<1x8x16xf32> to vector<8x16xf32>
    %c0_99 = arith.constant 0 : index
    %c91_100 = arith.constant 91 : index
    %82 = vector.load %arg4[%c0_99, %c91_100] : memref<8x422xf32, #tpu.memory_space<vmem>>, vector<8x16xf32>
    tpu.vector_store %arg4[%c0_99, %c91_100], %81 {strides = array<i32>} : memref<8x422xf32, #tpu.memory_space<vmem>>, vector<8x16xf32>,
    %c1_101 = arith.constant 1 : index
    %c0_102 = arith.constant 0 : index
    %c80_103 = arith.constant 80 : index
    %83 = vector.load %arg1[%c1_101, %c0_102, %c80_103] : memref<2x8x256xf32, #tpu.memory_space<vmem>>, vector<1x8x16xf32>
    %84 = vector.shape_cast %83 : vector<1x8x16xf32> to vector<8x16xf32>
    %c0_104 = arith.constant 0 : index
    %c109_105 = arith.constant 109 : index
    %85 = vector.load %arg4[%c0_104, %c109_105] : memref<8x422xf32, #tpu.memory_space<vmem>>, vector<8x16xf32>
    tpu.vector_store %arg4[%c0_104, %c109_105], %84 {strides = array<i32>} : memref<8x422xf32, #tpu.memory_space<vmem>>, vector<8x16xf32>,
    %c1_106 = arith.constant 1 : index
    %c0_107 = arith.constant 0 : index
    %c96_108 = arith.constant 96 : index
    %86 = vector.load %arg1[%c1_106, %c0_107, %c96_108] : memref<2x8x256xf32, #tpu.memory_space<vmem>>, vector<1x8x16xf32>
    %87 = vector.shape_cast %86 : vector<1x8x16xf32> to vector<8x16xf32>
    %c0_109 = arith.constant 0 : index
    %c127_110 = arith.constant 127 : index
    %88 = vector.load %arg4[%c0_109, %c127_110] : memref<8x422xf32, #tpu.memory_space<vmem>>, vector<8x16xf32>
    tpu.vector_store %arg4[%c0_109, %c127_110], %87 {strides = array<i32>} : memref<8x422xf32, #tpu.memory_space<vmem>>, vector<8x16xf32>,
    %c1_111 = arith.constant 1 : index
    %c0_112 = arith.constant 0 : index
    %c112_113 = arith.constant 112 : index
    %89 = vector.load %arg1[%c1_111, %c0_112, %c112_113] : memref<2x8x256xf32, #tpu.memory_space<vmem>>, vector<1x8x16xf32>
    %90 = vector.shape_cast %89 : vector<1x8x16xf32> to vector<8x16xf32>
    %c0_114 = arith.constant 0 : index
    %c145_115 = arith.constant 145 : index
    %91 = vector.load %arg4[%c0_114, %c145_115] : memref<8x422xf32, #tpu.memory_space<vmem>>, vector<8x16xf32>
    tpu.vector_store %arg4[%c0_114, %c145_115], %90 {strides = array<i32>} : memref<8x422xf32, #tpu.memory_space<vmem>>, vector<8x16xf32>,
    %c1_116 = arith.constant 1 : index
    %c0_117 = arith.constant 0 : index
    %c128_118 = arith.constant 128 : index
    %92 = vector.load %arg1[%c1_116, %c0_117, %c128_118] : memref<2x8x256xf32, #tpu.memory_space<vmem>>, vector<1x8x16xf32>
    %93 = vector.shape_cast %92 : vector<1x8x16xf32> to vector<8x16xf32>
    %c0_119 = arith.constant 0 : index
    %c163_120 = arith.constant 163 : index
    %94 = vector.load %arg4[%c0_119, %c163_120] : memref<8x422xf32, #tpu.memory_space<vmem>>, vector<8x16xf32>
    tpu.vector_store %arg4[%c0_119, %c163_120], %93 {strides = array<i32>} : memref<8x422xf32, #tpu.memory_space<vmem>>, vector<8x16xf32>,
    %c1_121 = arith.constant 1 : index
    %c0_122 = arith.constant 0 : index
    %c144_123 = arith.constant 144 : index
    %95 = vector.load %arg1[%c1_121, %c0_122, %c144_123] : memref<2x8x256xf32, #tpu.memory_space<vmem>>, vector<1x8x16xf32>
    %96 = vector.shape_cast %95 : vector<1x8x16xf32> to vector<8x16xf32>
    %c0_124 = arith.constant 0 : index
    %c181_125 = arith.constant 181 : index
    %97 = vector.load %arg4[%c0_124, %c181_125] : memref<8x422xf32, #tpu.memory_space<vmem>>, vector<8x16xf32>
    tpu.vector_store %arg4[%c0_124, %c181_125], %96 {strides = array<i32>} : memref<8x422xf32, #tpu.memory_space<vmem>>, vector<8x16xf32>,
    %c1_126 = arith.constant 1 : index
    %c0_127 = arith.constant 0 : index
    %c160_128 = arith.constant 160 : index
    %98 = vector.load %arg1[%c1_126, %c0_127, %c160_128] : memref<2x8x256xf32, #tpu.memory_space<vmem>>, vector<1x8x16xf32>
    %99 = vector.shape_cast %98 : vector<1x8x16xf32> to vector<8x16xf32>
    %c0_129 = arith.constant 0 : index
    %c199_130 = arith.constant 199 : index
    %100 = vector.load %arg4[%c0_129, %c199_130] : memref<8x422xf32, #tpu.memory_space<vmem>>, vector<8x16xf32>
    tpu.vector_store %arg4[%c0_129, %c199_130], %99 {strides = array<i32>} : memref<8x422xf32, #tpu.memory_space<vmem>>, vector<8x16xf32>,
    %c1_131 = arith.constant 1 : index
    %c0_132 = arith.constant 0 : index
    %c176_133 = arith.constant 176 : index
    %101 = vector.load %arg1[%c1_131, %c0_132, %c176_133] : memref<2x8x256xf32, #tpu.memory_space<vmem>>, vector<1x8x16xf32>
    %102 = vector.shape_cast %101 : vector<1x8x16xf32> to vector<8x16xf32>
    %c0_134 = arith.constant 0 : index
    %c217_135 = arith.constant 217 : index
    %103 = vector.load %arg4[%c0_134, %c217_135] : memref<8x422xf32, #tpu.memory_space<vmem>>, vector<8x16xf32>
    tpu.vector_store %arg4[%c0_134, %c217_135], %102 {strides = array<i32>} : memref<8x422xf32, #tpu.memory_space<vmem>>, vector<8x16xf32>,
    %c1_136 = arith.constant 1 : index
    %c0_137 = arith.constant 0 : index
    %c192_138 = arith.constant 192 : index
    %104 = vector.load %arg1[%c1_136, %c0_137, %c192_138] : memref<2x8x256xf32, #tpu.memory_space<vmem>>, vector<1x8x16xf32>
    %105 = vector.shape_cast %104 : vector<1x8x16xf32> to vector<8x16xf32>
    %c0_139 = arith.constant 0 : index
    %c235_140 = arith.constant 235 : index
    %106 = vector.load %arg4[%c0_139, %c235_140] : memref<8x422xf32, #tpu.memory_space<vmem>>, vector<8x16xf32>
    tpu.vector_store %arg4[%c0_139, %c235_140], %105 {strides = array<i32>} : memref<8x422xf32, #tpu.memory_space<vmem>>, vector<8x16xf32>,
    %c1_141 = arith.constant 1 : index
    %c0_142 = arith.constant 0 : index
    %c208_143 = arith.constant 208 : index
    %107 = vector.load %arg1[%c1_141, %c0_142, %c208_143] : memref<2x8x256xf32, #tpu.memory_space<vmem>>, vector<1x8x16xf32>
    %108 = vector.shape_cast %107 : vector<1x8x16xf32> to vector<8x16xf32>
    %c0_144 = arith.constant 0 : index
    %c253_145 = arith.constant 253 : index
    %109 = vector.load %arg4[%c0_144, %c253_145] : memref<8x422xf32, #tpu.memory_space<vmem>>, vector<8x16xf32>
    tpu.vector_store %arg4[%c0_144, %c253_145], %108 {strides = array<i32>} : memref<8x422xf32, #tpu.memory_space<vmem>>, vector<8x16xf32>,
    %c1_146 = arith.constant 1 : index
    %c0_147 = arith.constant 0 : index
    %c224_148 = arith.constant 224 : index
    %110 = vector.load %arg1[%c1_146, %c0_147, %c224_148] : memref<2x8x256xf32, #tpu.memory_space<vmem>>, vector<1x8x16xf32>
    %111 = vector.shape_cast %110 : vector<1x8x16xf32> to vector<8x16xf32>
    %c0_149 = arith.constant 0 : index
    %c271_150 = arith.constant 271 : index
    %112 = vector.load %arg4[%c0_149, %c271_150] : memref<8x422xf32, #tpu.memory_space<vmem>>, vector<8x16xf32>
    tpu.vector_store %arg4[%c0_149, %c271_150], %111 {strides = array<i32>} : memref<8x422xf32, #tpu.memory_space<vmem>>, vector<8x16xf32>,
    %c1_151 = arith.constant 1 : index
    %c0_152 = arith.constant 0 : index
    %c240_153 = arith.constant 240 : index
    %113 = vector.load %arg1[%c1_151, %c0_152, %c240_153] : memref<2x8x256xf32, #tpu.memory_space<vmem>>, vector<1x8x16xf32>
    %114 = vector.shape_cast %113 : vector<1x8x16xf32> to vector<8x16xf32>
    %c0_154 = arith.constant 0 : index
    %c289_155 = arith.constant 289 : index
    %115 = vector.load %arg4[%c0_154, %c289_155] : memref<8x422xf32, #tpu.memory_space<vmem>>, vector<8x16xf32>
    tpu.vector_store %arg4[%c0_154, %c289_155], %114 {strides = array<i32>} : memref<8x422xf32, #tpu.memory_space<vmem>>, vector<8x16xf32>,
    %c0_156 = arith.constant 0 : index
    %c0_157 = arith.constant 0 : index
    %116 = vector.load %arg4[%c0_156, %c0_157] : memref<8x422xf32, #tpu.memory_space<vmem>>, vector<8x384xf32>
    %c0_158 = arith.constant 0 : index
    %c384 = arith.constant 384 : index
    %117 = vector.load %arg5[%c0_158, %c384] : memref<72x768xf32, #tpu.memory_space<vmem>>, vector<8x384xf32>
    tpu.vector_store %arg5[%c0_158, %c384], %116 {strides = array<i32>} : memref<72x768xf32, #tpu.memory_space<vmem>>, vector<8x384xf32>,
    %c0_159 = arith.constant 0 : index
    %c1_160 = arith.constant 1 : index
    %118 = vector.load %arg4[%c0_159, %c1_160] : memref<8x422xf32, #tpu.memory_space<vmem>>, vector<8x384xf32>
    %c8_161 = arith.constant 8 : index
    %c384_162 = arith.constant 384 : index
    %119 = vector.load %arg5[%c8_161, %c384_162] : memref<72x768xf32, #tpu.memory_space<vmem>>, vector<8x384xf32>
    tpu.vector_store %arg5[%c8_161, %c384_162], %118 {strides = array<i32>} : memref<72x768xf32, #tpu.memory_space<vmem>>, vector<8x384xf32>,
    %c0_163 = arith.constant 0 : index
    %c2_164 = arith.constant 2 : index
    %120 = vector.load %arg4[%c0_163, %c2_164] : memref<8x422xf32, #tpu.memory_space<vmem>>, vector<8x384xf32>
    %c16_165 = arith.constant 16 : index
    %c384_166 = arith.constant 384 : index
    %121 = vector.load %arg5[%c16_165, %c384_166] : memref<72x768xf32, #tpu.memory_space<vmem>>, vector<8x384xf32>
    tpu.vector_store %arg5[%c16_165, %c384_166], %120 {strides = array<i32>} : memref<72x768xf32, #tpu.memory_space<vmem>>, vector<8x384xf32>,
    %c0_167 = arith.constant 0 : index
    %c18_168 = arith.constant 18 : index
    %122 = vector.load %arg4[%c0_167, %c18_168] : memref<8x422xf32, #tpu.memory_space<vmem>>, vector<8x384xf32>
    %c24_169 = arith.constant 24 : index
    %c384_170 = arith.constant 384 : index
    %123 = vector.load %arg5[%c24_169, %c384_170] : memref<72x768xf32, #tpu.memory_space<vmem>>, vector<8x384xf32>
    tpu.vector_store %arg5[%c24_169, %c384_170], %122 {strides = array<i32>} : memref<72x768xf32, #tpu.memory_space<vmem>>, vector<8x384xf32>,
    %c0_171 = arith.constant 0 : index
    %c19_172 = arith.constant 19 : index
    %124 = vector.load %arg4[%c0_171, %c19_172] : memref<8x422xf32, #tpu.memory_space<vmem>>, vector<8x384xf32>
    %c32_173 = arith.constant 32 : index
    %c384_174 = arith.constant 384 : index
    %125 = vector.load %arg5[%c32_173, %c384_174] : memref<72x768xf32, #tpu.memory_space<vmem>>, vector<8x384xf32>
    tpu.vector_store %arg5[%c32_173, %c384_174], %124 {strides = array<i32>} : memref<72x768xf32, #tpu.memory_space<vmem>>, vector<8x384xf32>,
    %c0_175 = arith.constant 0 : index
    %c20_176 = arith.constant 20 : index
    %126 = vector.load %arg4[%c0_175, %c20_176] : memref<8x422xf32, #tpu.memory_space<vmem>>, vector<8x384xf32>
    %c40_177 = arith.constant 40 : index
    %c384_178 = arith.constant 384 : index
    %127 = vector.load %arg5[%c40_177, %c384_178] : memref<72x768xf32, #tpu.memory_space<vmem>>, vector<8x384xf32>
    tpu.vector_store %arg5[%c40_177, %c384_178], %126 {strides = array<i32>} : memref<72x768xf32, #tpu.memory_space<vmem>>, vector<8x384xf32>,
    %c0_179 = arith.constant 0 : index
    %c36_180 = arith.constant 36 : index
    %128 = vector.load %arg4[%c0_179, %c36_180] : memref<8x422xf32, #tpu.memory_space<vmem>>, vector<8x384xf32>
    %c48_181 = arith.constant 48 : index
    %c384_182 = arith.constant 384 : index
    %129 = vector.load %arg5[%c48_181, %c384_182] : memref<72x768xf32, #tpu.memory_space<vmem>>, vector<8x384xf32>
    tpu.vector_store %arg5[%c48_181, %c384_182], %128 {strides = array<i32>} : memref<72x768xf32, #tpu.memory_space<vmem>>, vector<8x384xf32>,
    %c0_183 = arith.constant 0 : index
    %c37_184 = arith.constant 37 : index
    %130 = vector.load %arg4[%c0_183, %c37_184] : memref<8x422xf32, #tpu.memory_space<vmem>>, vector<8x384xf32>
    %c56_185 = arith.constant 56 : index
    %c384_186 = arith.constant 384 : index
    %131 = vector.load %arg5[%c56_185, %c384_186] : memref<72x768xf32, #tpu.memory_space<vmem>>, vector<8x384xf32>
    tpu.vector_store %arg5[%c56_185, %c384_186], %130 {strides = array<i32>} : memref<72x768xf32, #tpu.memory_space<vmem>>, vector<8x384xf32>,
    %c0_187 = arith.constant 0 : index
    %c38_188 = arith.constant 38 : index
    %132 = vector.load %arg4[%c0_187, %c38_188] : memref<8x422xf32, #tpu.memory_space<vmem>>, vector<8x384xf32>
    %c64_189 = arith.constant 64 : index
    %c384_190 = arith.constant 384 : index
    %133 = vector.load %arg5[%c64_189, %c384_190] : memref<72x768xf32, #tpu.memory_space<vmem>>, vector<8x384xf32>
    tpu.vector_store %arg5[%c64_189, %c384_190], %132 {strides = array<i32>} : memref<72x768xf32, #tpu.memory_space<vmem>>, vector<8x384xf32>,
    %c0_191 = arith.constant 0 : index
    %c0_192 = arith.constant 0 : index
    %134 = vector.load %arg2[%c0_191, %c0_192] : memref<16x72xf32, #tpu.memory_space<vmem>>, vector<16x72xf32>
    %c0_193 = arith.constant 0 : index
    %c0_194 = arith.constant 0 : index
    %135 = vector.load %arg5[%c0_193, %c0_194] : memref<72x768xf32, #tpu.memory_space<vmem>>, vector<72x768xf32>
    %cst_195 = arith.constant dense<0.000000e+00> : vector<16x768xf32>
    %136 = tpu.matmul %134, %135, %cst_195 {dimension_numbers = #tpu.dot_dimension_numbers<[1], [0], [0], [1], [0, 0, 1, 1], [], []>} : vector<16x72xf32>, vector<72x768xf32>, vector<16x768xf32> -> vector<16x768xf32>
    %137 = vector.extract_strided_slice %136 {offsets = [0, 0], sizes = [16, 384], strides = [1, 1]} : vector<16x768xf32> to vector<16x384xf32>
    %c0_196 = arith.constant 0 : index
    %c0_197 = arith.constant 0 : index
    %c0_198 = arith.constant 0 : index
    %138 = vector.load %arg3[%c0_196, %c0_197, %c0_198] : memref<2x16x384xf32, #tpu.memory_space<vmem>>, vector<1x16x384xf32>
    %139 = vector.shape_cast %138 : vector<1x16x384xf32> to vector<16x384xf32>
    %140 = vector.shape_cast %137 : vector<16x384xf32> to vector<1x16x384xf32>
    tpu.vector_store %arg3[%c0_196, %c0_197, %c0_198], %140 {strides = array<i32>} : memref<2x16x384xf32, #tpu.memory_space<vmem>>, vector<1x16x384xf32>,
    %141 = vector.extract_strided_slice %136 {offsets = [0, 384], sizes = [16, 384], strides = [1, 1]} : vector<16x768xf32> to vector<16x384xf32>
    %c1_199 = arith.constant 1 : index
    %c0_200 = arith.constant 0 : index
    %c0_201 = arith.constant 0 : index
    %142 = vector.load %arg3[%c1_199, %c0_200, %c0_201] : memref<2x16x384xf32, #tpu.memory_space<vmem>>, vector<1x16x384xf32>
    %143 = vector.shape_cast %142 : vector<1x16x384xf32> to vector<16x384xf32>
    %144 = vector.shape_cast %141 : vector<16x384xf32> to vector<1x16x384xf32>
    tpu.vector_store %arg3[%c1_199, %c0_200, %c0_201], %144 {strides = array<i32>} : memref<2x16x384xf32, #tpu.memory_space<vmem>>, vector<1x16x384xf32>,
    return
  }
  func.func @transform_0(%arg0: i32) -> (i32, i32, i32) {
    %c0_i32 = arith.constant 0 : i32
    %c0_i32_0 = arith.constant 0 : i32
    %c0_i32_1 = arith.constant 0 : i32
    return %arg0, %c0_i32, %c0_i32_0 : i32, i32, i32
  }
  func.func @transform_1(%arg0: i32) -> (i32, i32) {
    %c0_i32 = arith.constant 0 : i32
    %c0_i32_0 = arith.constant 0 : i32
    %c0_i32_1 = arith.constant 0 : i32
    return %c0_i32, %c0_i32_0 : i32, i32
  }
  func.func @transform_2(%arg0: i32) -> (i32, i32, i32) {
    %c0_i32 = arith.constant 0 : i32
    %c0_i32_0 = arith.constant 0 : i32
    %c0_i32_1 = arith.constant 0 : i32
    return %arg0, %c0_i32, %c0_i32_0 : i32, i32, i32
  }
}

</mosaic_0001>

<bundles_post_ra>
// kernel: tpu_custom_call.1
= control target key start
LH: loop header
LB: loop body
LE: loop exit
PB: predicated region body
PF: predicated region fallthrough
CT: control target
= control target key end

     0   :  { %7 = vsyncpa [#allocation5], 0  ;;  %s1699_s0 = inlined_call_operand.hbm [shape: f32[2,8,256], index: 0, kind: input, shape index: {}]   ;;  %s1700_s1 = inlined_call_operand.hbm [shape: f32[16,72], index: 1, kind: input, shape index: {}]   ;;  %s1701_s2 = inlined_call_operand.hbm [shape: f32[2,16,384], index: 2, kind: output, shape index: {}]  }
   0x1   :  { %8 = vsyncpa [#allocation8], 0 }
   0x2   :  { %9 = vsyncpa [#allocation6], 0  ;;  %s1315_s9 = smov [#allocation4]   ;;  %s1243_s13 = scalar_lea.hbm %s1699_s0, 512 }
   0x3   :  { %s15_s10 = sshll.u32 %s1315_s9, 4  ;;  %p1244_p0 = scmp.ne.s32.totalorder %s1699_s0, %s1243_s13  ;;  %s16_s10 = int_to_ptr.vmem [resolvable:$true] %s15_s10 }
   0x4   :  { %p1247_p1 = scmp.lt.u32.totalorder %s1243_s13, %s1699_s0 }
   0x6   :  { %p1249_p2 = pnand %p1247_p1, %p1244_p0 }
   0x8   :  { %1252 = shalt.err (!%p1249_p2)
}
   0x9   :  { %s1253_s18 = scalar_lea.vmem %s16_s10, 512  ;;  %p1258_p4 = scmp.lt.s32.totalorder %s16_s10, %s16_s10 }
   0xa   :  { %p1254_p3 = scmp.ne.s32.totalorder %s16_s10, %s1253_s18  ;;  %p1259_p5 = scmp.lt.s32.totalorder %s1253_s18, %s1253_s18 }
   0xc   :  { %p1260_p6 = por %p1259_p5, %p1258_p4 }
   0xe   :  { %p1261_p7 = pnand %p1260_p6, %p1254_p3 }
  0x10   :  { %1264 = shalt.err (!%p1261_p7)
}
  0x11   :  { %s1316_s19 = smov 256   ;;  %s1317_s20 = smov 16  }
  0x12   :  { %21 = dma.hbm_to_vmem [thread:$0]  %s1699_s0, 512, %s16_s10, [#allocation5], %s1316_s19, %s1316_s19, %s1317_s20  }
  0x13   :  { %s1318_s23 = smov [#allocation7]   ;;  %s1265_s27 = scalar_lea.hbm %s1700_s1, 256 }
  0x14   :  { %s27_s24 = sshll.u32 %s1318_s23, 4  ;;  %p1266_p8 = scmp.ne.s32.totalorder %s1700_s1, %s1265_s27  ;;  %s28_s24 = int_to_ptr.vmem [resolvable:$true] %s27_s24 }
  0x15   :  { %p1269_p9 = scmp.lt.u32.totalorder %s1265_s27, %s1700_s1 }
  0x17   :  { %p1271_p10 = pnand %p1269_p9, %p1266_p8 }
  0x19   :  { %1274 = shalt.err (!%p1271_p10)
}
  0x1a   :  { %s1275_s4 = scalar_lea.vmem %s28_s24, 256  ;;  %p1280_p12 = scmp.lt.s32.totalorder %s28_s24, %s28_s24 }
  0x1b   :  { %p1276_p11 = scmp.ne.s32.totalorder %s28_s24, %s1275_s4  ;;  %p1281_p13 = scmp.lt.s32.totalorder %s1275_s4, %s1275_s4 }
  0x1d   :  { %p1282_p0 = por %p1281_p13, %p1280_p12 }
  0x1f   :  { %p1283_p1 = pnand %p1282_p0, %p1276_p11 }
  0x21   :  { %1286 = shalt.err (!%p1283_p1)
}
  0x22   :  { %s1319_s0 = smov 128   ;;  %s1320_s5 = smov 8  }
  0x23   :  { %33 = dma.hbm_to_vmem [thread:$0]  %s1700_s1, 256, %s28_s24, [#allocation8], %s1319_s0, %s1319_s0, %s1320_s5  }
  0x24   :  { %1309 = dma.done.wait [#allocation5], 512  }
  0x25   :  { %1310 = vsyncadd [#allocation5], 4294966784 }
  0x26   :  { %1311 = dma.done.wait [#allocation8], 256  }
  0x27   :  { %1312 = vsyncadd [#allocation8], 4294967040  ;;  %v1321_v0 = vmov 0.0   ;;  %v87_v1 = vld [vmem:[#allocation4] sm:$0xff]  ;;  %s1322_s8 = smov 31   ;;  %s1323_s1 = smov 19  }
  0x28   :  { %41 = vst [vmem:[#allocation2 + $0x8] sm:$0xff] %v1321_v0  ;;  %40 = vst [vmem:[#allocation2] sm:$0xff] %v1321_v0  ;;  %807 = vmatprep.mubr.f32.mxu0 %v1321_v0  ;;  %884 = vmatprep.mubr.f32.mxu1 %v1321_v0  ;;  %v103_v2 = vld [vmem:[#allocation4 + $0x8] sm:$0xff]  ;;  %s1324_s9 = smov 33   ;;  %s1325_s10 = smov 35   ;;  %vm43_vm0 = vcmask 310272  }
  0x29   :  { %42 = vst [vmem:[#allocation2 + $0x10] sm:$0xff] %v1321_v0  ;;  %89 = vrot.lane.b32.xlu0 %v87_v1, %s1322_s8  ;;  %47 = vrot.lane.b32.xlu1 %v87_v1, %s1323_s1  ;;  %s1326_s11 = smov 21   ;;  %s1327_s12 = smov 37   ;;  %44 = vst.msk [vmem:[#allocation2 + $0x18] sm:$0xff] %vm43_vm0, %v1321_v0  ;;  %v412_v3 = vld [vmem:[#allocation4 + $0x10] sm:$0xff]  ;;  %v425_v4 = vld [vmem:[#allocation4 + $0x18] sm:$0xff] }
  0x2a   :  { %s1328_s13 = smov 23   ;;  %s1329_s14 = smov 39   ;;  %vm94_vm1 = vcmask 121856   ;;  %vm50_vm2 = vcmask 285848   ;;  %vm101_vm3 = vcmask 269448   ;;  %vm108_vm4 = vcmask 417048  }
  0x2b   :  { %s1330_s15 = smov 25   ;;  %s1331_s16 = smov 41   ;;  %vm57_vm5 = vcmask 433448   ;;  %vm115_vm6 = vcmask 564648   ;;  %vm64_vm7 = vcmask 581048   ;;  %vm122_vm8 = vcmask 712248  }
  0x2c   :  { %s1332_s17 = smov 27   ;;  %s1333_s18 = smov 43   ;;  %vm71_vm9 = vcmask 728648   ;;  %vm129_vm10 = vcmask 859848   ;;  %vm78_vm11 = vcmask 876248   ;;  %vm136_vm12 = vcmask 1007448  }
  0x2d   :  { %98 = vrot.lane.b32.xlu0 %v87_v1, %s1324_s9  ;;  %105 = vrot.lane.b32.xlu1 %v103_v2, %s1325_s10  ;;  %s1334_s19 = smov 29   ;;  %s1335_s20 = smov 45   ;;  %vm85_vm13 = vcmask 1023848   ;;  %vm143_vm14 = vcmask 1048552   ;;  %vm145_vm15 = vcmask 105472   ;;  %vm92_vm0 = vcmask 1048568  }
  0x2e   :  { %s1336_s21 = smov 47   ;;  %s1337_s22 = smov 49  }
  0x2f   :  { %s1338_s23 = smov 126   ;;  %s1339_s24 = smov 109  }
  0x30   :  { %v1414_v21 = vld [vmem:[#allocation2 + $0x18] sm:$0xff]  ;;  %s1340_s25 = smov 92   ;;  %s1341_s26 = smov 90  }
  0x31   :  { %54 = vrot.lane.b32.xlu0 %v87_v1, %s1326_s11  ;;  %112 = vrot.lane.b32.xlu1 %v103_v2, %s1327_s12  ;;  %s1342_s27 = smov 127   ;;  %s1343_s28 = smov 110  }
  0x32   :  { %s1344_s29 = smov 108   ;;  %s1345_s30 = smov 91  }
  0x33   :  { %s1346_s3 = smov [#allocation9]  }
  0x34   :  { %s992_s4 = sshll.u32 %s1346_s3, 4  ;;  %s993_s4 = int_to_ptr.vmem [resolvable:$true] %s992_s4 }
  0x35   :  { %61 = vrot.lane.b32.xlu0 %v87_v1, %s1328_s13  ;;  %119 = vrot.lane.b32.xlu1 %v103_v2, %s1329_s14  ;;  %s1287_s0 = scalar_lea.vmem %s993_s4, 1536  ;;  %p1292_p3 = scmp.lt.s32.totalorder %s993_s4, %s993_s4 }
  0x36   :  { %p1288_p2 = scmp.ne.s32.totalorder %s993_s4, %s1287_s0  ;;  %p1293_p4 = scmp.lt.s32.totalorder %s1287_s0, %s1287_s0 }
  0x38   :  { %p1294_p5 = por %p1293_p4, %p1292_p3 }
  0x39   :  { %68 = vrot.lane.b32.xlu0 %v87_v1, %s1330_s15  ;;  %126 = vrot.lane.b32.xlu1 %v103_v2, %s1331_s16 }
  0x3a   :  { %p1295_p6 = pnand %p1294_p5, %p1288_p2 }
  0x3d   :  { %75 = vrot.lane.b32.xlu0 %v87_v1, %s1332_s17  ;;  %133 = vrot.lane.b32.xlu1 %v103_v2, %s1333_s18 }
  0x41   :  { %82 = vrot.lane.b32.xlu0 %v87_v1, %s1334_s19  ;;  %140 = vrot.lane.b32.xlu1 %v103_v2, %s1335_s20 }
  0x45   :  { %414 = vrot.lane.b32.xlu0 %v412_v3, %s1322_s8  ;;  %378 = vrot.lane.b32.xlu1 %v412_v3, %s1323_s1 }
  0x49   :  { %421 = vrot.lane.b32.xlu0 %v412_v3, %s1324_s9  ;;  %384 = vrot.lane.b32.xlu1 %v412_v3, %s1326_s11 }
  0x4d   :  { %427 = vrot.lane.b32.xlu0 %v425_v4, %s1325_s10  ;;  %390 = vrot.lane.b32.xlu1 %v412_v3, %s1328_s13 }
  0x51   :  { %433 = vrot.lane.b32.xlu0 %v425_v4, %s1327_s12  ;;  %396 = vrot.lane.b32.xlu1 %v412_v3, %s1330_s15 }
  0x55   :  { %439 = vrot.lane.b32.xlu0 %v425_v4, %s1329_s14  ;;  %402 = vrot.lane.b32.xlu1 %v412_v3, %s1332_s17 }
  0x59   :  { %445 = vrot.lane.b32.xlu0 %v425_v4, %s1331_s16  ;;  %149 = vrot.lane.b32.xlu1 %v103_v2, %s1336_s21 }
  0x5d   :  { %408 = vrot.lane.b32.xlu0 %v412_v3, %s1334_s19  ;;  %451 = vrot.lane.b32.xlu1 %v425_v4, %s1333_s18 }
  0x61   :  { %156 = vrot.lane.b32.xlu0 %v103_v2, %s1337_s22  ;;  %457 = vrot.lane.b32.xlu1 %v425_v4, %s1335_s20 }
  0x65   :  { %464 = vrot.lane.b32.xlu0 %v425_v4, %s1336_s21  ;;  %470 = vrot.lane.b32.xlu1 %v425_v4, %s1337_s22 }
  0x9b   :  { %v90_v5 = vpop.permute.xlu0 %89  ;;  %v48_v6 = vpop.permute.xlu1 %47 }
  0x9c   :  { %95 = vst.msk [vmem:[#allocation2 + $0x8] sm:$0xff] %vm94_vm1, %v90_v5 }
  0x9d   :  { %51 = vst.msk [vmem:[#allocation2] sm:$0xff] %vm50_vm2, %v48_v6 }
  0x9f   :  { %v99_v7 = vpop.permute.xlu0 %98  ;;  %v106_v8 = vpop.permute.xlu1 %105 }
  0xa0   :  { %102 = vst.msk [vmem:[#allocation2 + $0x8] sm:$0xff] %vm101_vm3, %v99_v7 }
  0xa1   :  { %109 = vst.msk [vmem:[#allocation2 + $0x8] sm:$0xff] %vm108_vm4, %v106_v8 }
  0xa3   :  { %v55_v9 = vpop.permute.xlu0 %54  ;;  %v113_v10 = vpop.permute.xlu1 %112 }
  0xa4   :  { %58 = vst.msk [vmem:[#allocation2] sm:$0xff] %vm57_vm5, %v55_v9 }
  0xa5   :  { %116 = vst.msk [vmem:[#allocation2 + $0x8] sm:$0xff] %vm115_vm6, %v113_v10 }
  0xa7   :  { %v62_v11 = vpop.permute.xlu0 %61  ;;  %v120_v12 = vpop.permute.xlu1 %119 }
  0xa8   :  { %65 = vst.msk [vmem:[#allocation2] sm:$0xff] %vm64_vm7, %v62_v11 }
  0xa9   :  { %123 = vst.msk [vmem:[#allocation2 + $0x8] sm:$0xff] %vm122_vm8, %v120_v12 }
  0xab   :  { %v69_v13 = vpop.permute.xlu0 %68  ;;  %v127_v14 = vpop.permute.xlu1 %126 }
  0xac   :  { %72 = vst.msk [vmem:[#allocation2] sm:$0xff] %vm71_vm9, %v69_v13 }
  0xad   :  { %130 = vst.msk [vmem:[#allocation2 + $0x8] sm:$0xff] %vm129_vm10, %v127_v14 }
  0xaf   :  { %v76_v15 = vpop.permute.xlu0 %75  ;;  %v134_v16 = vpop.permute.xlu1 %133 }
  0xb0   :  { %79 = vst.msk [vmem:[#allocation2] sm:$0xff] %vm78_vm11, %v76_v15 }
  0xb1   :  { %137 = vst.msk [vmem:[#allocation2 + $0x8] sm:$0xff] %vm136_vm12, %v134_v16 }
  0xb3   :  { %v83_v17 = vpop.permute.xlu0 %82  ;;  %v141_v18 = vpop.permute.xlu1 %140 }
  0xb4   :  { %86 = vst.msk [vmem:[#allocation2] sm:$0xff] %vm85_vm13, %v83_v17 }
  0xb5   :  { %144 = vst.msk [vmem:[#allocation2 + $0x8] sm:$0xff] %vm143_vm14, %v141_v18 }
  0xb6   :  { %146 = vst.msk [vmem:[#allocation2 + $0x10] sm:$0xff] %vm145_vm15, %v141_v18 }
  0xb7   :  { %93 = vst.msk [vmem:[#allocation2] sm:$0xff] %vm92_vm0, %v90_v5  ;;  %v415_v19 = vpop.permute.xlu0 %414  ;;  %v379_v20 = vpop.permute.xlu1 %378 }
  0xbb   :  { %v422_v23 = vpop.permute.xlu0 %421  ;;  %v385_v24 = vpop.permute.xlu1 %384 }
  0xbc   :  { %v1416_v22 = vld [vmem:[#allocation2 + $0x8] sm:$0xff] }
  0xbd   :  { %418 = vst.msk [vmem:[#allocation2 + $0x8] sm:$0xff] %vm94_vm1, %v415_v19  ;;  %vm152_vm1 = vcmask 253048  }
  0xbe   :  { %v1418_v25 = vld [vmem:[#allocation2] sm:$0xff]  ;;  %424 = vst.msk [vmem:[#allocation2 + $0x8] sm:$0xff] %vm101_vm3, %v422_v23  ;;  %vm209_vm3 = vcmask 1031168  }
  0xbf   :  { %381 = vst.msk [vmem:[#allocation2] sm:$0xff] %vm50_vm2, %v379_v20  ;;  %v1108_v26 = vpack.i.bf16 %v1414_v21, %v1418_v25  ;;  %v428_v27 = vpop.permute.xlu0 %427  ;;  %v391_v28 = vpop.permute.xlu1 %390  ;;  %vm159_vm2 = vcmask 400648  }
  0xc0   :  { %387 = vst.msk [vmem:[#allocation2] sm:$0xff] %vm57_vm5, %v385_v24  ;;  %vm235_vm5 = vcmask 900096  }
  0xc1   :  { %1109 = vrot.lane.b32.xlu1 %v1108_v26, %s1338_s23  ;;  %393 = vst.msk [vmem:[#allocation2] sm:$0xff] %vm64_vm7, %v391_v28  ;;  %vm287_vm7 = vcmask 883712  }
  0xc2   :  { %430 = vst.msk [vmem:[#allocation2 + $0x8] sm:$0xff] %vm108_vm4, %v428_v27  ;;  %vm183_vm4 = vcmask 1039360  }
  0xc3   :  { %v434_v29 = vpop.permute.xlu0 %433  ;;  %v397_v30 = vpop.permute.xlu1 %396 }
  0xc4   :  { %399 = vst.msk [vmem:[#allocation2] sm:$0xff] %vm71_vm9, %v397_v30  ;;  %vm339_vm9 = vcmask 744448  }
  0xc5   :  { %1119 = vrot.lane.b32.xlu1 %v1108_v26, %s1339_s24  ;;  %436 = vst.msk [vmem:[#allocation2 + $0x8] sm:$0xff] %vm115_vm6, %v434_v29  ;;  %vm261_vm6 = vcmask 891904  }
  0xc7   :  { %v440_v31 = vpop.permute.xlu0 %439  ;;  %v403_v32 = vpop.permute.xlu1 %402 }
  0xc8   :  { %405 = vst.msk [vmem:[#allocation2] sm:$0xff] %vm78_vm11, %v403_v32  ;;  %vm736_vm11 = vcmask 588800  }
  0xc9   :  { %1129 = vrot.lane.b32.xlu1 %v1108_v26, %s1340_s25  ;;  %442 = vst.msk [vmem:[#allocation2 + $0x8] sm:$0xff] %vm122_vm8, %v440_v31  ;;  %vm313_vm8 = vcmask 752640  }
  0xcb   :  { %v446_v33 = vpop.permute.xlu0 %445  ;;  %v150_v34 = vpop.permute.xlu1 %149 }
  0xcc   :  { %153 = vst.msk [vmem:[#allocation2 + $0x10] sm:$0xff] %vm152_vm1, %v150_v34 }
  0xcd   :  { %448 = vst.msk [vmem:[#allocation2 + $0x8] sm:$0xff] %vm129_vm10, %v446_v33  ;;  %vm365_vm10 = vcmask 736256  }
  0xcf   :  { %v409_v35 = vpop.permute.xlu0 %408  ;;  %v452_v36 = vpop.permute.xlu1 %451 }
  0xd0   :  { %411 = vst.msk [vmem:[#allocation2] sm:$0xff] %vm85_vm13, %v409_v35 }
  0xd1   :  { %454 = vst.msk [vmem:[#allocation2 + $0x8] sm:$0xff] %vm136_vm12, %v452_v36 }
  0xd2   :  { %417 = vst.msk [vmem:[#allocation2] sm:$0xff] %vm92_vm0, %v415_v19 }
  0xd3   :  { %v157_v37 = vpop.permute.xlu0 %156  ;;  %v458_v38 = vpop.permute.xlu1 %457 }
  0xd4   :  { %160 = vst.msk [vmem:[#allocation2 + $0x10] sm:$0xff] %vm159_vm2, %v157_v37 }
  0xd5   :  { %460 = vst.msk [vmem:[#allocation2 + $0x8] sm:$0xff] %vm143_vm14, %v458_v38 }
  0xd7   :  { %v465_v39 = vpop.permute.xlu0 %464  ;;  %v471_v41 = vpop.permute.xlu1 %470 }
  0xd9   :  { %v1460_v46 = vld [vmem:[#allocation2] sm:$0xff] }
  0xdb   :  { %v1441_v40 = vld [vmem:[#allocation2 + $0x10] sm:$0xff] }
  0xdc   :  { %361 = vrot.lane.b32.xlu0 %v1441_v40, %s1341_s26  ;;  %v1143_v42 = vpack.i.bf16 %v1441_v40, %v1416_v22  ;;  %461 = vst.msk [vmem:[#allocation2 + $0x10] sm:$0xff] %vm145_vm15, %v458_v38  ;;  %v1458_v45 = vld [vmem:[#allocation2 + $0x8] sm:$0xff] }
  0xdd   :  { %467 = vst.msk [vmem:[#allocation2 + $0x10] sm:$0xff] %vm152_vm1, %v465_v39  ;;  %v1178_v47 = vpack.i.bf16 %v1458_v45, %v1460_v46 }
  0xde   :  { %1144 = vrot.lane.b32.xlu1 %v1143_v42, %s1338_s23  ;;  %473 = vst.msk [vmem:[#allocation2 + $0x10] sm:$0xff] %vm159_vm2, %v471_v41 }
  0xe0   :  { %1104 = vrot.lane.b32.xlu0 %v1108_v26, %s1342_s27 }
  0xe2   :  { %1154 = vrot.lane.b32.xlu1 %v1143_v42, %s1339_s24 }
  0xe4   :  { %1114 = vrot.lane.b32.xlu0 %v1108_v26, %s1343_s28 }
  0xe5   :  { %v1452_v43 = vld [vmem:[#allocation2 + $0x10] sm:$0xff] }
  0xe6   :  { %1164 = vrot.lane.b32.xlu1 %v1143_v42, %s1340_s25  ;;  %v1173_v44 = vpack.i.bf16 %v1414_v21, %v1452_v43 }
  0xe8   :  { %1124 = vrot.lane.b32.xlu0 %v1108_v26, %s1344_s29 }
  0xea   :  { %359 = vrot.lane.b32.xlu1 %v1416_v22, %s1341_s26 }
  0xec   :  { %1134 = vrot.lane.b32.xlu0 %v1108_v26, %s1345_s30 }
  0xee   :  { %1174 = vrot.lane.b32.xlu1 %v1173_v44, %s1342_s27 }
  0xf0   :  { %1139 = vrot.lane.b32.xlu0 %v1143_v42, %s1342_s27 }
  0xf2   :  { %1179 = vrot.lane.b32.xlu1 %v1178_v47, %s1342_s27 }
  0xf4   :  { %1149 = vrot.lane.b32.xlu0 %v1143_v42, %s1343_s28 }
  0xf6   :  { %1184 = vrot.lane.b32.xlu1 %v1178_v47, %s1338_s23 }
  0xf8   :  { %1159 = vrot.lane.b32.xlu0 %v1143_v42, %s1344_s29 }
  0xfa   :  { %1194 = vrot.lane.b32.xlu1 %v1178_v47, %s1339_s24 }
  0xfc   :  { %1169 = vrot.lane.b32.xlu0 %v1143_v42, %s1345_s30 }
  0xfe   :  { %1204 = vrot.lane.b32.xlu1 %v1178_v47, %s1340_s25 }
 0x100   :  { %1189 = vrot.lane.b32.xlu0 %v1178_v47, %s1343_s28 }
 0x102   :  { %363 = vrot.lane.b32.xlu1 %v1414_v21, %s1341_s26 }
 0x104   :  { %1199 = vrot.lane.b32.xlu0 %v1178_v47, %s1344_s29 }
 0x106   :  { %665 = vrot.lane.b32.xlu1 %v1458_v45, %s1341_s26 }
 0x108   :  { %1209 = vrot.lane.b32.xlu0 %v1178_v47, %s1345_s30 }
 0x10a   :  { %1219 = vrot.lane.b32.xlu1 %v1173_v44, %s1343_s28 }
 0x10c   :  { %663 = vrot.lane.b32.xlu0 %v1460_v46, %s1341_s26 }
 0x10e   :  { %1229 = vrot.lane.b32.xlu1 %v1173_v44, %s1344_s29 }
 0x110   :  { %357 = vrot.lane.b32.xlu0 %v1418_v25, %s1341_s26 }
 0x112   :  { %1239 = vrot.lane.b32.xlu1 %v1173_v44, %s1345_s30 }
 0x114   :  { %1214 = vrot.lane.b32.xlu0 %v1173_v44, %s1338_s23 }
 0x116   :  { %669 = vrot.lane.b32.xlu1 %v1414_v21, %s1341_s26 }
 0x118   :  { %1224 = vrot.lane.b32.xlu0 %v1173_v44, %s1339_s24 }
 0x11c   :  { %1234 = vrot.lane.b32.xlu0 %v1173_v44, %s1340_s25 }
 0x120   :  { %667 = vrot.lane.b32.xlu0 %v1452_v43, %s1341_s26 }
 0x133   :  { %v1482_v48 = vpop.permute.xlu1 %1109 }
 0x134   :  { %v1111_v10 = vunpack.i.l.bf16 %v1482_v48 }
 0x137   :  { %v1484_v49 = vpop.permute.xlu1 %1119 }
 0x138   :  { %v1121_v31 = vunpack.i.l.bf16 %v1484_v49 }
 0x13b   :  { %v1486_v50 = vpop.permute.xlu1 %1129 }
 0x13c   :  { %v1131_v42 = vunpack.i.l.bf16 %v1486_v50 }
 0x14e   :  { %v1488_v51 = vpop.permute.xlu0 %361 }
 0x150   :  { %v1490_v52 = vpop.permute.xlu1 %1144 }
 0x151   :  { %v1147_v2 = vunpack.i.h.bf16 %v1490_v52  ;;  %v1146_v3 = vunpack.i.l.bf16 %v1490_v52 }
 0x152   :  { %v1105_v53 = vpop.permute.xlu0 %1104 }
 0x153   :  { %v1106_v62 = vunpack.i.l.bf16 %v1105_v53  ;;  %v1107_v4 = vunpack.i.h.bf16 %v1105_v53  ;;  %v210_v23 = vsel %vm209_vm3, %v1111_v10, %v1146_v3 }
 0x154   :  { %v1492_v54 = vpop.permute.xlu1 %1154 }
 0x155   :  { %v1157_v19 = vunpack.i.h.bf16 %v1492_v54  ;;  %v1156_v24 = vunpack.i.l.bf16 %v1492_v54 }
 0x156   :  { %v1494_v55 = vpop.permute.xlu0 %1114 }
 0x157   :  { %v1116_v15 = vunpack.i.l.bf16 %v1494_v55  ;;  %v263_v38 = vsel %vm261_vm6, %v1156_v24, %v1157_v19  ;;  %v1117_v10 = vunpack.i.h.bf16 %v1494_v55 }
 0x158   :  { %v1496_v56 = vpop.permute.xlu1 %1164 }
 0x159   :  { %v1167_v35 = vunpack.i.h.bf16 %v1496_v56  ;;  %v1166_v36 = vunpack.i.l.bf16 %v1496_v56 }
 0x15a   :  { %v1498_v57 = vpop.permute.xlu0 %1124 }
 0x15b   :  { %v1126_v32 = vunpack.i.l.bf16 %v1498_v57 }
 0x15c   :  { %v1500_v58 = vpop.permute.xlu1 %359 }
 0x15e   :  { %v1502_v59 = vpop.permute.xlu0 %1134 }
 0x15f   :  { %v1136_v53 = vunpack.i.l.bf16 %v1502_v59 }
 0x160   :  { %v1504_v60 = vpop.permute.xlu1 %1174 }
 0x162   :  { %v1140_v61 = vpop.permute.xlu0 %1139 }
 0x163   :  { %v1142_v63 = vunpack.i.h.bf16 %v1140_v61  ;;  %v1141_v1 = vunpack.i.l.bf16 %v1140_v61 }
 0x164   :  { %v1508_v5 = vpop.permute.xlu1 %1179 }
 0x165   :  { %v1182_v6 = vunpack.i.h.bf16 %v1508_v5  ;;  %v1181_v7 = vunpack.i.l.bf16 %v1508_v5  ;;  %v185_v8 = vsel %vm183_vm4, %v1141_v1, %v1142_v63  ;;  %v184_v9 = vsel %vm183_vm4, %v1106_v62, %v1141_v1 }
 0x166   :  { %v1515_v11 = vpop.permute.xlu0 %1149  ;;  %v1011_v12 = vpack.c.bf16 %v185_v8, %v1416_v22  ;;  %v1013_v13 = vpack.c.bf16 %v184_v9, %v1418_v25  ;;  %v186_v14 = vsel %vm183_vm4, %v1142_v63, %v1107_v4  ;;  %v211_v22 = vsel %vm209_vm3, %v1146_v3, %v1147_v2 }
 0x167   :  { %v1152_v16 = vunpack.i.h.bf16 %v1515_v11  ;;  %v1151_v17 = vunpack.i.l.bf16 %v1515_v11  ;;  %v496_v18 = vsel %vm183_vm4, %v1181_v7, %v1182_v6  ;;  %v1029_v25 = vpack.c.bf16 %v186_v14, %v1441_v40 }
 0x168   :  { %1012 = vmatprep.subr.bf16.mxu0 %v1011_v12  ;;  %v1527_v20 = vpop.permute.xlu1 %1184  ;;  %v1027_v21 = vpack.c.bf16 %v496_v18, %v1460_v46  ;;  %v262_v40 = vsel %vm261_vm6, %v1121_v31, %v1156_v24  ;;  %v315_v1 = vsel %vm313_vm8, %v1166_v36, %v1167_v35  ;;  %v314_v3 = vsel %vm313_vm8, %v1131_v42, %v1166_v36 }
 0x169   :  { %1014 = vmatpush1.bf16.msra.mxu0 %v1013_v13  ;;  %v237_v26 = vsel %vm235_vm5, %v1151_v17, %v1152_v16  ;;  %v236_v27 = vsel %vm235_vm5, %v1116_v15, %v1151_v17  ;;  %v1187_v4 = vunpack.i.h.bf16 %v1527_v20  ;;  %v1186_v7 = vunpack.i.l.bf16 %v1527_v20 }
 0x16a   :  { %v1540_v28 = vpop.permute.xlu0 %1159  ;;  %1028 = vmatprep.subr.bf16.mxu1 %v1027_v21  ;;  %v1015_v29 = vpack.c.bf16 %v237_v26, %v211_v22  ;;  %v1017_v30 = vpack.c.bf16 %v236_v27, %v210_v23  ;;  %v1112_v18 = vunpack.i.h.bf16 %v1482_v48  ;;  %v367_v22 = vsel %vm365_vm10, %v1500_v58, %v1488_v51 }
 0x16b   :  { %v1162_v33 = vunpack.i.h.bf16 %v1540_v28  ;;  %v1161_v34 = vunpack.i.l.bf16 %v1540_v28  ;;  %1030 = vmatpush1.bf16.msra.mxu1 %v1029_v25  ;;  %v238_v55 = vsel %vm235_vm5, %v1152_v16, %v1117_v10  ;;  %v521_v25 = vsel %vm209_vm3, %v1186_v7, %v1187_v4  ;;  %v1642_v10 = vld [vmem:[#allocation7] sm:$0xff] }
 0x16c   :  { %1016 = vmatprep.subr.bf16.mxu0 %v1015_v29  ;;  %v1548_v37 = vpop.permute.xlu1 %1194  ;;  %v1127_v26 = vunpack.i.h.bf16 %v1498_v57  ;;  %v212_v16 = vsel %vm209_vm3, %v1147_v2, %v1112_v18  ;;  %v1122_v31 = vunpack.i.h.bf16 %v1484_v49  ;;  %v1137_v49 = vunpack.i.h.bf16 %v1502_v59  ;;  %v681_v18 = vld [vmem:[#allocation7 + $0x8] sm:$0xff] }
 0x16d   :  { %1018 = vmatpush1.bf16.msra.mxu0 %v1017_v30  ;;  %v289_v39 = vsel %vm287_vm7, %v1161_v34, %v1162_v33  ;;  %v288_v41 = vsel %vm287_vm7, %v1126_v32, %v1161_v34  ;;  %v1197_v23 = vunpack.i.h.bf16 %v1548_v37  ;;  %v1196_v24 = vunpack.i.l.bf16 %v1548_v37 }
 0x16e   :  { %v1557_v44 = vpop.permute.xlu0 %1169  ;;  %v1019_v46 = vpack.c.bf16 %v289_v39, %v263_v38  ;;  %v1021_v47 = vpack.c.bf16 %v288_v41, %v262_v40  ;;  %v1033_v30 = vpack.c.bf16 %v238_v55, %v212_v16  ;;  %v290_v57 = vsel %vm287_vm7, %v1162_v33, %v1127_v26 }
 0x16f   :  { %v1172_v61 = vunpack.i.h.bf16 %v1557_v44  ;;  %v1171_v62 = vunpack.i.l.bf16 %v1557_v44  ;;  %v571_v52 = vsel %vm261_vm6, %v1196_v24, %v1197_v23  ;;  %v264_v33 = vsel %vm261_vm6, %v1157_v19, %v1122_v31 }
 0x170   :  { %1020 = vmatprep.subr.bf16.mxu0 %v1019_v46  ;;  %v1562_v63 = vpop.permute.xlu1 %1204  ;;  %v1037_v42 = vpack.c.bf16 %v290_v57, %v264_v33  ;;  %v1132_v44 = vunpack.i.h.bf16 %v1486_v50  ;;  %v1177_v46 = vunpack.i.h.bf16 %v1504_v60 }
 0x171   :  { %1022 = vmatpush1.bf16.msra.mxu0 %v1021_v47  ;;  %v341_v8 = vsel %vm339_vm9, %v1171_v62, %v1172_v61  ;;  %v340_v9 = vsel %vm339_vm9, %v1136_v53, %v1171_v62  ;;  %v1207_v34 = vunpack.i.h.bf16 %v1562_v63  ;;  %v1206_v36 = vunpack.i.l.bf16 %v1562_v63 }
 0x172   :  { %v1573_v12 = vpop.permute.xlu0 %1189  ;;  %v1023_v13 = vpack.c.bf16 %v341_v8, %v315_v1  ;;  %v1025_v14 = vpack.c.bf16 %v340_v9, %v314_v3  ;;  %v1176_v47 = vunpack.i.l.bf16 %v1504_v60  ;;  %v342_v59 = vsel %vm339_vm9, %v1172_v61, %v1137_v49 }
 0x173   :  { %v1192_v15 = vunpack.i.h.bf16 %v1573_v12  ;;  %v1191_v17 = vunpack.i.l.bf16 %v1573_v12  ;;  %v621_v54 = vsel %vm313_vm8, %v1206_v36, %v1207_v34  ;;  %v316_v50 = vsel %vm313_vm8, %v1167_v35, %v1132_v44 }
 0x174   :  { %1024 = vmatprep.subr.bf16.mxu0 %v1023_v13  ;;  %v364_v21 = vpop.permute.xlu1 %363  ;;  %v1041_v60 = vpack.c.bf16 %v342_v59, %v316_v50  ;;  %v498_v61 = vsel %vm183_vm4, %v1176_v47, %v1177_v46  ;;  %v497_v7 = vsel %vm183_vm4, %v1182_v6, %v1176_v47 }
 0x175   :  { %1026 = vmatpush1.bf16.msra.mxu0 %v1025_v14  ;;  %v546_v48 = vsel %vm235_vm5, %v1191_v17, %v1192_v15  ;;  %v1043_v35 = vpack.c.bf16 %v498_v61, %v1452_v43  ;;  %v368_v14 = vsel %vm365_vm10, %v1488_v51, %v364_v21  ;;  %v1045_v5 = vpack.c.bf16 %v497_v7, %v1458_v45 }
 0x176   :  { %759 = vmatprep.subr.mxu0 %v367_v22  ;;  %v1593_v27 = vpop.permute.xlu0 %1199  ;;  %v1031_v11 = vpack.c.bf16 %v546_v48, %v521_v25 }
 0x177   :  { %v1202_v28 = vunpack.i.h.bf16 %v1593_v27  ;;  %v1201_v29 = vunpack.i.l.bf16 %v1593_v27 }
 0x178   :  { %v1601_v32 = vpop.permute.xlu1 %665  ;;  %1032 = vmatprep.subr.bf16.mxu1 %v1031_v11 }
 0x179   :  { %1034 = vmatpush1.bf16.msra.mxu1 %v1033_v30  ;;  %v596_v2 = vsel %vm287_vm7, %v1201_v29, %v1202_v28 }
 0x17a   :  { %v1613_v38 = vpop.permute.xlu0 %1209  ;;  %v1035_v39 = vpack.c.bf16 %v596_v2, %v571_v52 }
 0x17b   :  { %v1212_v40 = vunpack.i.h.bf16 %v1613_v38  ;;  %v1211_v41 = vunpack.i.l.bf16 %v1613_v38 }
 0x17c   :  { %1036 = vmatprep.subr.bf16.mxu1 %v1035_v39  ;;  %v1220_v53 = vpop.permute.xlu1 %1219 }
 0x17d   :  { %1038 = vmatpush1.bf16.msra.mxu1 %v1037_v42  ;;  %v646_v19 = vsel %vm339_vm9, %v1211_v41, %v1212_v40  ;;  %v1221_v13 = vunpack.i.l.bf16 %v1220_v53  ;;  %v1222_v17 = vunpack.i.h.bf16 %v1220_v53 }
 0x17e   :  { %v664_v62 = vpop.permute.xlu0 %663  ;;  %v1039_v1 = vpack.c.bf16 %v646_v19, %v621_v54 }
 0x17f   :  { %v671_v3 = vsel %vm365_vm10, %v664_v62, %v1601_v32  ;;  %v547_v51 = vsel %vm235_vm5, %v1192_v15, %v1221_v13  ;;  %v548_v25 = vsel %vm235_vm5, %v1221_v13, %v1222_v17 }
 0x180   :  { %1040 = vmatprep.subr.bf16.mxu1 %v1039_v1  ;;  %v1230_v9 = vpop.permute.xlu1 %1229 }
 0x181   :  { %1042 = vmatpush1.bf16.msra.mxu1 %v1041_v60  ;;  %v1231_v45 = vunpack.i.l.bf16 %v1230_v9  ;;  %v1232_v21 = vunpack.i.h.bf16 %v1230_v9 }
 0x182   :  { %v358_v8 = vpop.permute.xlu0 %357  ;;  %836 = vmatprep.subr.mxu1 %v671_v3 }
 0x183   :  { %v366_v56 = vsel %vm365_vm10, %v358_v8, %v1500_v58  ;;  %v597_v20 = vsel %vm287_vm7, %v1202_v28, %v1231_v45  ;;  %v598_v31 = vsel %vm287_vm7, %v1231_v45, %v1232_v21 }
 0x184   :  { %760 = vmatpush1.msra.mxu0 %v366_v56  ;;  %v1240_v22 = vpop.permute.xlu1 %1239 }
 0x185   :  { %837 = vmatpush1.msra.mxu1 %v368_v14  ;;  %1044 = vmatprep.subr.bf16.mxu0 %v1043_v35  ;;  %v1242_v16 = vunpack.i.h.bf16 %v1240_v22 }
 0x186   :  { %1005 = vmatmul.mubr.msk.f32.vlgmr.msra.gmra.mrb[0].mxu0 %vm736_vm11, %v1642_v10  ;;  %v1215_v6 = vpop.permute.xlu0 %1214  ;;  %1059 = vmatprep.subr.bf16.mxu1 %v1043_v35 }
 0x187   :  { %v1217_v58 = vunpack.i.h.bf16 %v1215_v6  ;;  %v1216_v43 = vunpack.i.l.bf16 %v1215_v6  ;;  %1046 = vmatpush1.bf16.msra.mxu0 %v1045_v5  ;;  %1007 = vmatmul.mubr.msk.f32.vlgmr.msra.gmra.mrb[0].mxu1 %vm736_vm11, %v1642_v10 }
 0x188   :  { %1064 = vmatpush1.bf16.msra.mxu1 %v1045_v5  ;;  %813 = vmatprep.mubr.f32.mxu0 %v1321_v0  ;;  %v670_v33 = vpop.permute.xlu1 %669 }
 0x189   :  { %v522_v55 = vsel %vm209_vm3, %v1187_v4, %v1216_v43  ;;  %v523_v24 = vsel %vm209_vm3, %v1216_v43, %v1217_v58  ;;  %890 = vmatprep.mubr.f32.mxu1 %v1321_v0  ;;  %v1241_v4 = vunpack.i.l.bf16 %v1240_v22 }
 0x18a   :  { %v1049_v48 = vpack.c.bf16 %v547_v51, %v522_v55  ;;  %v1225_v12 = vpop.permute.xlu0 %1224  ;;  %v1047_v26 = vpack.c.bf16 %v548_v25, %v523_v24  ;;  %1006 = vmatmul.mubr.msk.f32.gmra.mrb[2].mxu0 %vm736_vm11, %v681_v18 }
 0x18b   :  { %v1227_v15 = vunpack.i.h.bf16 %v1225_v12  ;;  %v1226_v11 = vunpack.i.l.bf16 %v1225_v12  ;;  %1008 = vmatmul.mubr.msk.f32.gmra.mrb[2].mxu1 %vm736_vm11, %v681_v18  ;;  %961 = vmatprep.mubr.f32.mxu0 %v1321_v0  ;;  %v647_v2 = vsel %vm339_vm9, %v1212_v40, %v1241_v4  ;;  %v648_v49 = vsel %vm339_vm9, %v1241_v4, %v1242_v16 }
 0x18c   :  { %1048 = vmatprep.subr.bf16.mxu0 %v1047_v26  ;;  %1060 = vmatprep.subr.bf16.mxu1 %v1047_v26 }
 0x18d   :  { %v572_v29 = vsel %vm261_vm6, %v1197_v23, %v1226_v11  ;;  %1050 = vmatpush1.bf16.msra.mxu0 %v1049_v48  ;;  %1065 = vmatpush1.bf16.msra.mxu1 %v1049_v48  ;;  %v573_v30 = vsel %vm261_vm6, %v1226_v11, %v1227_v15 }
 0x18e   :  { %v1053_v57 = vpack.c.bf16 %v597_v20, %v572_v29  ;;  %v1235_v36 = vpop.permute.xlu0 %1234  ;;  %v1051_v52 = vpack.c.bf16 %v598_v31, %v573_v30  ;;  %967 = vmatprep.mubr.f32.mxu1 %v1321_v0 }
 0x18f   :  { %v1237_v27 = vunpack.i.h.bf16 %v1235_v36  ;;  %v1236_v28 = vunpack.i.l.bf16 %v1235_v36 }
 0x190   :  { %1052 = vmatprep.subr.bf16.mxu0 %v1051_v52  ;;  %1061 = vmatprep.subr.bf16.mxu1 %v1051_v52 }
 0x191   :  { %v622_v37 = vsel %vm313_vm8, %v1207_v34, %v1236_v28  ;;  %1054 = vmatpush1.bf16.msra.mxu0 %v1053_v57  ;;  %1066 = vmatpush1.bf16.msra.mxu1 %v1053_v57  ;;  %v623_v23 = vsel %vm313_vm8, %v1236_v28, %v1237_v27 }
 0x192   :  { %v1057_v39 = vpack.c.bf16 %v647_v2, %v622_v37  ;;  %v668_v0 = vpop.permute.xlu0 %667  ;;  %v1055_v41 = vpack.c.bf16 %v648_v49, %v623_v23 }
 0x193   :  { %v673_v38 = vsel %vm365_vm10, %v668_v0, %v670_v33  ;;  %v672_v63 = vsel %vm365_vm10, %v1601_v32, %v668_v0 }
 0x194   :  { %1056 = vmatprep.subr.bf16.mxu0 %v1055_v41  ;;  %1062 = vmatprep.subr.bf16.mxu1 %v1055_v41 }
 0x195   :  { %1058 = vmatpush1.bf16.msra.mxu0 %v1057_v39  ;;  %1067 = vmatpush1.bf16.msra.mxu1 %v1057_v39 }
 0x196   :  { %913 = vmatprep.subr.mxu0 %v673_v38  ;;  %1063 = vmatprep.subr.mxu1 %v673_v38 }
 0x199   :  { %914 = vmatpush1.msra.mxu0 %v672_v63  ;;  %1068 = vmatpush1.msra.mxu1 %v672_v63 }
 0x19a   :  { %1009 = vmatmul.mubr.msk.f32.vlgmr.msra.gmra.mrb[4].mxu0 %vm736_vm11, %v1642_v10  ;;  %1010 = vmatmul.mubr.msk.f32.vlgmr.msra.gmra.mrb[4].mxu1 %vm736_vm11, %v681_v18 }
 0x259   :  { %v809_v34 = vpop.f32.mrb[0].mxu0 }
 0x25a   :  { %974 = vst [vmem:[#allocation9] sm:$0xff] %v809_v34  ;;  %v886_v40 = vpop.f32.mrb[0].mxu1  ;;  %v811_v42 = vpop.f32.mrb[1].mxu0 }
 0x25b   :  { %976 = vst [vmem:[#allocation9 + $0x10] sm:$0xff] %v886_v40  ;;  %975 = vst [vmem:[#allocation9 + $0x8] sm:$0xff] %v811_v42  ;;  %v888_v44 = vpop.f32.mrb[1].mxu1 }
 0x25c   :  { %981 = vst [vmem:[#allocation9 + $0x30] sm:$0xff] %v888_v44 }
 0x25d   :  { %v815_v46 = vpop.f32.mrb[2].mxu0 }
 0x25e   :  { %977 = vst [vmem:[#allocation9 + $0x18] sm:$0xff] %v815_v46  ;;  %v892_v47 = vpop.f32.mrb[2].mxu1  ;;  %v817_v59 = vpop.f32.mrb[3].mxu0 }
 0x25f   :  { %979 = vst [vmem:[#allocation9 + $0x28] sm:$0xff] %v892_v47  ;;  %978 = vst [vmem:[#allocation9 + $0x20] sm:$0xff] %v817_v59  ;;  %v894_v32 = vpop.f32.mrb[3].mxu1 }
 0x260   :  { %984 = vst [vmem:[#allocation9 + $0x48] sm:$0xff] %v894_v32 }
 0x26d   :  { %v963_v53 = vpop.f32.mrb[4].mxu0  ;;  %v969_v54 = vpop.f32.mrb[4].mxu1 }
 0x26e   :  { %982 = vst [vmem:[#allocation9 + $0x38] sm:$0xff] %v963_v53  ;;  %985 = vst [vmem:[#allocation9 + $0x50] sm:$0xff] %v969_v54  ;;  %v965_v19 = vpop.f32.mrb[5].mxu0  ;;  %v971_v62 = vpop.f32.mrb[5].mxu1 }
 0x26f   :  { %983 = vst [vmem:[#allocation9 + $0x40] sm:$0xff] %v965_v19  ;;  %986 = vst [vmem:[#allocation9 + $0x58] sm:$0xff] %v971_v62 }
 0x270   :  { %1298 = shalt.err (!%p1295_p6)
}
 0x271   :  { %s1299_s7 = scalar_lea.hbm %s1701_s2, 1536 }
 0x272   :  { %p1300_p7 = scmp.ne.s32.totalorder %s1701_s2, %s1299_s7  ;;  %p1303_p8 = scmp.lt.u32.totalorder %s1299_s7, %s1701_s2 }
 0x274   :  { %p1305_p9 = pnand %p1303_p8, %p1300_p7 }
 0x276   :  { %1308 = shalt.err (!%p1305_p9)
}
 0x277   :  { %s1347_s11 = smov 384   ;;  %s1348_s12 = smov 24  }
 0x278   :  { %998 = dma.vmem_to_hbm [thread:$0]  %s993_s4, 1536, %s1701_s2, [#allocation6], %s1347_s11, %s1347_s11, %s1348_s12  }
 0x279   :  { %1313 = dma.done.wait [#allocation6], 1536  }
 0x27a   :  { %1314 = vsyncadd [#allocation6], 4294965760 }
 0x27b   :  { %1002 = vsyncpa [#allocation5], 1 }
 0x27c   :  { %1003 = vsyncpa [#allocation8], 1 }
 0x27d   :  { %1004 = vsyncpa [#allocation6], 1 }

</bundles_post_ra>
